<compile_context>
chip_gen: v7x
topology: tpu7x:2x2x1
jax: 0.10.0
libtpu: 0.0.40
codegen_flags: <defaults>
</compile_context>

<pallas_src>
import functools

import numpy as np
import jax
import jax.numpy as jnp
from jax import lax
from jax.experimental import pallas as pl
from jax.experimental.pallas import tpu as pltpu


# ----------------------------------------------------------------------------
# Fused kernel: in-VMEM im2col (roll + mask), 2 merged tap-matmul stacks,
# MIM gates + MIMS inner cell + 1x1 c_cc conv, four lane-dense output stores.
# ----------------------------------------------------------------------------
def _mim_fused_kernel(
    # raw activations (C, HW) f32 (batch dim squeezed by BlockSpec)
    x_ref, h_ref, m_ref, c_ref, d_ref, clc_ref,
    # per-tap validity masks (k*k, HW) f32
    mask_ref,
    # merged outer conv: (k*k, 6*nh, cin_o) bf16 weights, (6*nh, 1) f32 bias
    w_out_ref, b_out_ref,
    # merged MIMS conv: (k*k, 4*nh, cin_m) bf16 weights, (4*nh, 1) f32 bias
    w_mims_ref, b_mims_ref,
    # 1x1 c_cc conv: (nh, 2*nh) bf16, (nh, 1) f32
    wcc_ref, bcc_ref,
    # outputs (nh, HW) f32
    newh_ref, newc_ref, newm_ref, newclc_ref,
    *, nh, shifts):
  bf16 = jnp.bfloat16

  m_st = m_ref[...]       # (nh, HW) f32 — also used by f_ * m
  clc_st = clc_ref[...]   # (nh, HW) f32 — also used by f_m * convlstm_c

  # conv inputs, channel-major, lane-dense (sublane concat of loaded values)
  act_o = jnp.concatenate([x_ref[...], h_ref[...], m_st], axis=0)
  act_m = jnp.concatenate([c_ref[...], d_ref[...], clc_st], axis=0)

  masks = mask_ref[...]                                    # (k*k, HW) f32
  mask_rows = [masks[t:t + 1, :] for t in range(len(shifts))]

  def merged_conv(act, w_ref, b_ref):
    # sum over the k*k taps: (Cout, Cin) x (Cin, HW) MXU matmuls, f32 accum.
    acc = None
    for t, s in enumerate(shifts):
      if s == 0:
        tap = act                                          # center tap: no roll/mask
      else:
        tap = pltpu.roll(act, shift=s, axis=1) * mask_rows[t]
      y = jnp.dot(w_ref[t], tap.astype(bf16),
                  preferred_element_type=jnp.float32)
      acc = y if acc is None else acc + y
    return acc + b_ref[...]

  def sig(v):  # sigmoid via one tanh EUP push (exact identity)
    return 0.5 * jnp.tanh(0.5 * v) + 0.5

  # merged pre-activations; gate sums + biases (+forget bias) already folded in
  po = merged_conv(act_o, w_out_ref, b_out_ref)   # (6nh, HW): [i, i_, g, g_, f_, o]
  pm = merged_conv(act_m, w_mims_ref, b_mims_ref) # (4nh, HW): [i_m, g_m, f_m, o_m]

  # ---- outer MIM gates ----
  i = sig(po[0 * nh:1 * nh])
  i_ = sig(po[1 * nh:2 * nh])
  g = jnp.tanh(po[2 * nh:3 * nh])
  g_ = jnp.tanh(po[3 * nh:4 * nh])
  f_ = sig(po[4 * nh:5 * nh])
  o = sig(po[5 * nh:6 * nh])
  new_m = f_ * m_st + i_ * g_

  # ---- MIMS(diff_h, c, convlstm_c) inner cell ----
  i_m = sig(pm[0 * nh:1 * nh])
  g_m = jnp.tanh(pm[1 * nh:2 * nh])
  f_m = sig(pm[2 * nh:3 * nh])
  o_m = sig(pm[3 * nh:4 * nh])
  new_clc = f_m * clc_st + i_m * g_m
  mims_h = o_m * jnp.tanh(new_clc)
  new_c = mims_h + i * g

  # ---- 1x1 c_cc conv: one bf16 K=2*nh matmul on sublane-stacked state ----
  cm = jnp.concatenate([new_c, new_m], axis=0).astype(bf16)     # (2nh, HW)
  cell = jnp.dot(wcc_ref[...], cm,
                 preferred_element_type=jnp.float32) + bcc_ref[...]
  new_h = o * jnp.tanh(cell)

  newh_ref[...] = new_h
  newc_ref[...] = new_c
  newm_ref[...] = new_m
  newclc_ref[...] = new_clc


# ----------------------------------------------------------------------------
# Wrapper (plain JAX under jit): merged-weight construction, masks, pallas_call
# ----------------------------------------------------------------------------
def _mim_forward(params, x, diff_h, h, c, m, convlstm_c, *, nh, filter_size):
  n, x_in, hh, ww = x.shape
  nh_in = h.shape[1]
  hw = hh * ww
  k = filter_size
  pad = k // 2
  kk = k * k
  fb = 1.0
  f32, bf16 = jnp.float32, jnp.bfloat16

  (w_t, b_t, w_s, b_s, w_x, b_x, w_h, b_h, w_d, b_d, w_c, b_c,
   w_cc, b_cc) = params

  def split(w, b, names):
    wsp = {nm: w[j * nh:(j + 1) * nh] for j, nm in enumerate(names)}
    bsp = {nm: b[j * nh:(j + 1) * nh] for j, nm in enumerate(names)}
    return wsp, bsp

  wt, bt = split(w_t, b_t, ("i", "g", "o"))          # t_cc(h)
  ws, bs = split(w_s, b_s, ("i", "g", "f", "o"))     # s_cc(m)
  wx, bx = split(w_x, b_x, ("i", "g", "f", "o"))     # x_cc(x)
  wh, bh = split(w_h, b_h, ("i", "g", "f", "o"))     # mims_h_t(c)
  wd, bd = split(w_d, b_d, ("i", "g", "f", "o"))     # mims_x(diff_h)
  wc, bc = split(w_c, b_c, ("i", "f", "o"))          # c_t(convlstm_c)

  z_h = jnp.zeros((nh, nh_in, k, k), f32)
  z_m = jnp.zeros((nh, nh_in, k, k), f32)
  z_c = jnp.zeros((nh, nh, k, k), f32)

  # merged outer conv on concat(x, h, m); rows = [i, i_, g, g_, f_, o]
  w_out = jnp.concatenate([
      jnp.concatenate([wx["i"], wt["i"], z_m], axis=1),
      jnp.concatenate([wx["i"], z_h, ws["i"]], axis=1),
      jnp.concatenate([wx["g"], wt["g"], z_m], axis=1),
      jnp.concatenate([wx["g"], z_h, ws["g"]], axis=1),
      jnp.concatenate([wx["f"], z_h, ws["f"]], axis=1),
      jnp.concatenate([wx["o"], wt["o"], ws["o"]], axis=1)], axis=0)
  b_out = jnp.concatenate([
      bx["i"] + bt["i"], bx["i"] + bs["i"], bx["g"] + bt["g"],
      bx["g"] + bs["g"], bx["f"] + bs["f"] + fb,
      bx["o"] + bt["o"] + bs["o"]])

  # merged MIMS conv on concat(c, diff_h, convlstm_c); rows = [i, g, f, o]
  w_mims = jnp.concatenate([
      jnp.concatenate([wh["i"], wd["i"], wc["i"]], axis=1),
      jnp.concatenate([wh["g"], wd["g"], z_c], axis=1),
      jnp.concatenate([wh["f"], wd["f"], wc["f"]], axis=1),
      jnp.concatenate([wh["o"], wd["o"], wc["o"]], axis=1)], axis=0)
  b_mims = jnp.concatenate([
      bh["i"] + bd["i"] + bc["i"], bh["g"] + bd["g"],
      bh["f"] + bd["f"] + bc["f"] + fb, bh["o"] + bd["o"] + bc["o"]])

  cin_o = x_in + 2 * nh_in
  cin_m = 3 * nh

  # (k*k, Cout, Cin) tap-major bf16 weight stacks (matches the roll tap order)
  w_out_taps = jnp.transpose(w_out, (2, 3, 0, 1)).reshape(
      kk, 6 * nh, cin_o).astype(bf16)
  w_mims_taps = jnp.transpose(w_mims, (2, 3, 0, 1)).reshape(
      kk, 4 * nh, cin_m).astype(bf16)
  b_out2 = b_out.reshape(6 * nh, 1).astype(f32)
  b_mims2 = b_mims.reshape(4 * nh, 1).astype(f32)
  wcc = w_cc.astype(bf16)                     # (nh, 2nh)
  bcc = b_cc.reshape(nh, 1).astype(f32)

  # per-tap lane shifts + 'same' zero-padding validity masks (compile-time)
  rr = np.arange(hh).reshape(hh, 1)
  cc = np.arange(ww).reshape(1, ww)
  shifts, mrows = [], []
  for dy in range(-pad, pad + 1):
    for dx in range(-pad, pad + 1):
      shifts.append(int((-(dy * ww + dx)) % hw))
      valid = ((rr + dy >= 0) & (rr + dy < hh) &
               (cc + dx >= 0) & (cc + dx < ww))
      mrows.append(valid.reshape(-1))
  masks = jnp.asarray(np.stack(mrows).astype(np.float32))    # (k*k, HW)

  # flattened (free) NCHW -> (N, C, HW); activations stay f32 (read once)
  x_f = x.reshape(n, x_in, hw)
  h_f = h.reshape(n, nh_in, hw)
  m_f = m.reshape(n, nh_in, hw)
  c_f = c.reshape(n, nh, hw)
  d_f = diff_h.reshape(n, nh, hw)
  clc_f = convlstm_c.reshape(n, nh, hw)

  # VMEM sizing: double-buffered f32 activations/outputs + constants +
  # conv pre-activations + gate/state temporaries (cap for v7x's 64 MiB VMEM)
  est = ((cin_o + cin_m) * hw * 4 * 2
         + 4 * nh * hw * 4 * 2
         + kk * hw * 4
         + kk * (6 * nh * cin_o + 4 * nh * cin_m) * 2
         + (cin_o + cin_m) * hw * 4 * 2
         + 18 * nh * hw * 4)
  vmem_limit = int(min(max(est * 2, 32 * 2 ** 20), 64 * 2 ** 20))

  def act_spec(ch):
    return pl.BlockSpec((None, ch, hw), lambda i: (i, 0, 0))

  def const_spec(*shape):
    return pl.BlockSpec(tuple(shape), lambda i: tuple(0 for _ in shape))

  out_sds = jax.ShapeDtypeStruct((n, nh, hw), f32)
  out_spec = pl.BlockSpec((None, nh, hw), lambda i: (i, 0, 0))

  kernel = functools.partial(_mim_fused_kernel, nh=nh, shifts=tuple(shifts))

  new_h, new_c, new_m, new_clc = pl.pallas_call(
      kernel,
      out_shape=(out_sds,) * 4,
      grid=(n,),
      in_specs=[act_spec(x_in), act_spec(nh_in), act_spec(nh_in),
                act_spec(nh), act_spec(nh), act_spec(nh),
                const_spec(kk, hw),
                const_spec(kk, 6 * nh, cin_o), const_spec(6 * nh, 1),
                const_spec(kk, 4 * nh, cin_m), const_spec(4 * nh, 1),
                const_spec(nh, 2 * nh), const_spec(nh, 1)],
      out_specs=(out_spec,) * 4,
      compiler_params=pltpu.CompilerParams(
          dimension_semantics=("parallel",),
          vmem_limit_bytes=vmem_limit),
  )(x_f, h_f, m_f, c_f, d_f, clc_f, masks, w_out_taps, b_out2,
    w_mims_taps, b_mims2, wcc, bcc)

  def rs(a):
    return a.reshape(n, nh, hh, ww)

  return rs(new_h), rs(new_c), rs(new_m), rs(new_clc)


# ----------------------------------------------------------------------------
# Module wrapper (NCHW / OIHW, like the PyTorch reference)
# ----------------------------------------------------------------------------
class MIMBlockPallas:
  def __init__(self, filter_size, num_hidden_in, num_hidden, x_shape_in, norm,
               key):
    assert not norm, "NormLayer path not implemented (norm=False only)"
    # the forward math (f_ * m etc.) requires num_hidden_in == num_hidden
    assert num_hidden_in == num_hidden
    # f32 sublane alignment for the gate splits / output stores
    assert num_hidden % 8 == 0, "num_hidden must be a multiple of 8"
    self.filter_size = filter_size
    self.pad = filter_size // 2
    self.num_hidden_in = num_hidden_in
    self.num_hidden = num_hidden
    self.x_shape_in = x_shape_in
    self._forget_bias = 1.0

    k = filter_size
    nh = num_hidden

    def conv_params(key_, cout, cin, ksize):
      kw_, kb_ = jax.random.split(key_)
      scale = float(1.0 / np.sqrt(cin * ksize * ksize))
      w = jax.random.uniform(kw_, (cout, cin, ksize, ksize), jnp.float32,
                             -scale, scale)                   # OIHW (PyTorch)
      b = jax.random.uniform(kb_, (cout,), jnp.float32, -scale, scale)
      return w, b

    keys = jax.random.split(key, 7)
    self.w_t_cc, self.b_t_cc = conv_params(keys[0], 3 * nh, num_hidden_in, k)
    self.w_s_cc, self.b_s_cc = conv_params(keys[1], 4 * nh, num_hidden_in, k)
    self.w_x_cc, self.b_x_cc = conv_params(keys[2], 4 * nh, x_shape_in, k)
    self.w_mims_h_t, self.b_mims_h_t = conv_params(keys[3], 4 * nh, nh, k)
    self.w_mims_x, self.b_mims_x = conv_params(keys[4], 4 * nh, nh, k)
    self.w_c_t, self.b_c_t = conv_params(keys[5], 3 * nh, nh, k)
    w_cc, self.b_c_cc = conv_params(keys[6], nh, 2 * nh, 1)
    self.w_c_cc = w_cc.reshape(nh, 2 * nh)      # 1x1 conv -> channel matmul

    self._params = (self.w_t_cc, self.b_t_cc, self.w_s_cc, self.b_s_cc,
                    self.w_x_cc, self.b_x_cc, self.w_mims_h_t, self.b_mims_h_t,
                    self.w_mims_x, self.b_mims_x, self.w_c_t, self.b_c_t,
                    self.w_c_cc, self.b_c_cc)
    self._forward = jax.jit(functools.partial(
        _mim_forward, nh=nh, filter_size=k))

  def __call__(self, x, diff_h, h, c, m, convlstm_c):
    return self._forward(self._params, x, diff_h, h, c, m, convlstm_c)


# ----------------------------------------------------------------------------
# Pure-JAX reference (mirrors the PyTorch module, norm=False, bf16 conv ops)
# ----------------------------------------------------------------------------
def _reference_forward(block, x, diff_h, h, c, m, convlstm_c):
  nh = block.num_hidden
  fb = 1.0
  f32, bf = jnp.float32, jnp.bfloat16
  p = block.pad

  def conv(a, w, b):
    y = lax.conv_general_dilated(
        a.astype(bf).astype(f32), w.astype(bf).astype(f32),
        window_strides=(1, 1), padding=[(p, p), (p, p)],
        dimension_numbers=("NCHW", "OIHW", "NCHW"),
        precision=lax.Precision.HIGHEST)
    return y + b[None, :, None, None]

  def split(t, kparts):
    return [t[:, j * nh:(j + 1) * nh] for j in range(kparts)]

  t_cc = conv(h, block.w_t_cc, block.b_t_cc)
  s_cc = conv(m, block.w_s_cc, block.b_s_cc)
  x_cc = conv(x, block.w_x_cc, block.b_x_cc)
  i_s, g_s, f_s, o_s = split(s_cc, 4)
  i_t, g_t, o_t = split(t_cc, 3)
  i_x, g_x, f_x, o_x = split(x_cc, 4)
  i = jax.nn.sigmoid(i_x + i_t)
  i_ = jax.nn.sigmoid(i_x + i_s)
  g = jnp.tanh(g_x + g_t)
  g_ = jnp.tanh(g_x + g_s)
  f_ = jax.nn.sigmoid(f_x + f_s + fb)
  o = jax.nn.sigmoid(o_x + o_t + o_s)
  new_m = f_ * m + i_ * g_

  # MIMS(diff_h, c, convlstm_c)
  h_concat = conv(c, block.w_mims_h_t, block.b_mims_h_t)
  x_concat = conv(diff_h, block.w_mims_x, block.b_mims_x)
  ct_act = conv(convlstm_c, block.w_c_t, block.b_c_t)
  i_h, g_h, f_h, o_h = split(h_concat, 4)
  i_d, g_d, f_d, o_d = split(x_concat, 4)
  i_c, f_c, o_c = split(ct_act, 3)
  i_m = jax.nn.sigmoid(i_h + i_c + i_d)
  f_m = jax.nn.sigmoid(f_h + f_c + f_d + fb)
  new_clc = f_m * convlstm_c + i_m * jnp.tanh(g_h + g_d)
  mims_h = jax.nn.sigmoid(o_h + o_d + o_c) * jnp.tanh(new_clc)
  new_c = mims_h + i * g

  cellcat = jnp.concatenate([new_c, new_m], axis=1)
  w1 = block.w_c_cc.astype(bf).astype(f32)
  cell = jnp.einsum("oc,nchw->nohw", w1, cellcat.astype(bf).astype(f32),
                    precision=lax.Precision.HIGHEST)
  cell = cell + block.b_c_cc[None, :, None, None]
  new_h = o * jnp.tanh(cell)
  return new_h, new_c, new_m, new_clc


# ----------------------------------------------------------------------------
if __name__ == "__main__":
  filter_size = 3
  num_hidden = 8
  num_hidden_in = 8   # must equal num_hidden (gate * state products)
  x_shape_in = 4
  N, H, W = 2, 16, 16

  key = jax.random.PRNGKey(0)
  k_mod, kx, kd, kh, kc, km, kl = jax.random.split(key, 7)

  block = MIMBlockPallas(filter_size, num_hidden_in, num_hidden, x_shape_in,
                         norm=False, key=k_mod)

  # NCHW inputs, matching the PyTorch reference layout.
  x = jax.random.normal(kx, (N, x_shape_in, H, W), jnp.float32)
  diff_h = jax.random.normal(kd, (N, num_hidden, H, W), jnp.float32)
  h = jax.random.normal(kh, (N, num_hidden_in, H, W), jnp.float32)
  c = jax.random.normal(kc, (N, num_hidden, H, W), jnp.float32)
  m = jax.random.normal(km, (N, num_hidden_in, H, W), jnp.float32)
  convlstm_c = jax.random.normal(kl, (N, num_hidden, H, W), jnp.float32)

  outs = block(x, diff_h, h, c, m, convlstm_c)
  outs = jax.block_until_ready(outs)
  new_h, new_c, new_m, new_clc = outs
  for a in outs:
    assert a.shape == (N, num_hidden, H, W)

  # Correctness check against a pure-JAX reference (same bf16 conv rounding;
  # residual difference is f32 accumulation order + sigmoid-via-tanh).
  refs = _reference_forward(block, x, diff_h, h, c, m, convlstm_c)
  max_err = max(float(jnp.max(jnp.abs(a - b))) for a, b in zip(outs, refs))
  assert max_err < 2e-2, f"mismatch vs reference: max abs err = {max_err}"

  print("KERNEL_OK")
</pallas_src>

<mosaic_0001>
module attributes {stable_mosaic.version = 11 : i64} {
  func.func @_mim_fused_kernel(%arg0: i32, %arg1: memref<1x4x256xf32, #tpu.memory_space<vmem>>, %arg2: memref<1x8x256xf32, #tpu.memory_space<vmem>>, %arg3: memref<1x8x256xf32, #tpu.memory_space<vmem>>, %arg4: memref<1x8x256xf32, #tpu.memory_space<vmem>>, %arg5: memref<1x8x256xf32, #tpu.memory_space<vmem>>, %arg6: memref<1x8x256xf32, #tpu.memory_space<vmem>>, %arg7: memref<9x256xf32, #tpu.memory_space<vmem>>, %arg8: memref<9x48x20xbf16, #tpu.memory_space<vmem>>, %arg9: memref<48x1xf32, #tpu.memory_space<vmem>>, %arg10: memref<9x32x24xbf16, #tpu.memory_space<vmem>>, %arg11: memref<32x1xf32, #tpu.memory_space<vmem>>, %arg12: memref<8x16xbf16, #tpu.memory_space<vmem>>, %arg13: memref<8x1xf32, #tpu.memory_space<vmem>>, %arg14: memref<1x8x256xf32, #tpu.memory_space<vmem>>, %arg15: memref<1x8x256xf32, #tpu.memory_space<vmem>>, %arg16: memref<1x8x256xf32, #tpu.memory_space<vmem>>, %arg17: memref<1x8x256xf32, #tpu.memory_space<vmem>>) attributes {dimension_semantics = [#tpu.dimension_semantics<parallel>], iteration_bounds = array<i64: 2>, scalar_prefetch = 0 : i64, scratch_operands = 0 : i64, tpu.core_type = #tpu.core_type<tc>, window_params = [{transform_indices = @transform_0, window_bounds = array<i64: 1, 4, 256>}, {transform_indices = @transform_1, window_bounds = array<i64: 1, 8, 256>}, {transform_indices = @transform_2, window_bounds = array<i64: 1, 8, 256>}, {transform_indices = @transform_3, window_bounds = array<i64: 1, 8, 256>}, {transform_indices = @transform_4, window_bounds = array<i64: 1, 8, 256>}, {transform_indices = @transform_5, window_bounds = array<i64: 1, 8, 256>}, {pipeline_mode = #tpu.pipeline_mode<synchronous>, transform_indices = @transform_6, window_bounds = array<i64: 9, 256>}, {pipeline_mode = #tpu.pipeline_mode<synchronous>, transform_indices = @transform_7, window_bounds = array<i64: 9, 48, 20>}, {pipeline_mode = #tpu.pipeline_mode<synchronous>, transform_indices = @transform_8, window_bounds = array<i64: 48, 1>}, {pipeline_mode = #tpu.pipeline_mode<synchronous>, transform_indices = @transform_9, window_bounds = array<i64: 9, 32, 24>}, {pipeline_mode = #tpu.pipeline_mode<synchronous>, transform_indices = @transform_10, window_bounds = array<i64: 32, 1>}, {pipeline_mode = #tpu.pipeline_mode<synchronous>, transform_indices = @transform_11, window_bounds = array<i64: 8, 16>}, {pipeline_mode = #tpu.pipeline_mode<synchronous>, transform_indices = @transform_12, window_bounds = array<i64: 8, 1>}, {transform_indices = @transform_13, window_bounds = array<i64: 1, 8, 256>}, {transform_indices = @transform_14, window_bounds = array<i64: 1, 8, 256>}, {transform_indices = @transform_15, window_bounds = array<i64: 1, 8, 256>}, {transform_indices = @transform_16, window_bounds = array<i64: 1, 8, 256>}]} {
    %c0 = arith.constant 0 : index
    %c0_0 = arith.constant 0 : index
    %c0_1 = arith.constant 0 : index
    %0 = vector.load %arg3[%c0, %c0_0, %c0_1] : memref<1x8x256xf32, #tpu.memory_space<vmem>>, vector<1x8x256xf32>
    %1 = vector.shape_cast %0 : vector<1x8x256xf32> to vector<8x256xf32>
    %c0_2 = arith.constant 0 : index
    %c0_3 = arith.constant 0 : index
    %c0_4 = arith.constant 0 : index
    %2 = vector.load %arg6[%c0_2, %c0_3, %c0_4] : memref<1x8x256xf32, #tpu.memory_space<vmem>>, vector<1x8x256xf32>
    %3 = vector.shape_cast %2 : vector<1x8x256xf32> to vector<8x256xf32>
    %c0_5 = arith.constant 0 : index
    %c0_6 = arith.constant 0 : index
    %c0_7 = arith.constant 0 : index
    %4 = vector.load %arg1[%c0_5, %c0_6, %c0_7] : memref<1x4x256xf32, #tpu.memory_space<vmem>>, vector<1x4x256xf32>
    %5 = vector.shape_cast %4 : vector<1x4x256xf32> to vector<4x256xf32>
    %c0_8 = arith.constant 0 : index
    %c0_9 = arith.constant 0 : index
    %c0_10 = arith.constant 0 : index
    %6 = vector.load %arg2[%c0_8, %c0_9, %c0_10] : memref<1x8x256xf32, #tpu.memory_space<vmem>>, vector<1x8x256xf32>
    %7 = vector.shape_cast %6 : vector<1x8x256xf32> to vector<8x256xf32>
    %8 = tpu.concatenate %5, %7, %1 in 0 : vector<4x256xf32>, vector<8x256xf32>, vector<8x256xf32> -> vector<20x256xf32>
    %c0_11 = arith.constant 0 : index
    %c0_12 = arith.constant 0 : index
    %c0_13 = arith.constant 0 : index
    %9 = vector.load %arg4[%c0_11, %c0_12, %c0_13] : memref<1x8x256xf32, #tpu.memory_space<vmem>>, vector<1x8x256xf32>
    %10 = vector.shape_cast %9 : vector<1x8x256xf32> to vector<8x256xf32>
    %c0_14 = arith.constant 0 : index
    %c0_15 = arith.constant 0 : index
    %c0_16 = arith.constant 0 : index
    %11 = vector.load %arg5[%c0_14, %c0_15, %c0_16] : memref<1x8x256xf32, #tpu.memory_space<vmem>>, vector<1x8x256xf32>
    %12 = vector.shape_cast %11 : vector<1x8x256xf32> to vector<8x256xf32>
    %13 = tpu.concatenate %10, %12, %3 in 0 : vector<8x256xf32>, vector<8x256xf32>, vector<8x256xf32> -> vector<24x256xf32>
    %c0_17 = arith.constant 0 : index
    %c0_18 = arith.constant 0 : index
    %14 = vector.load %arg7[%c0_17, %c0_18] : memref<9x256xf32, #tpu.memory_space<vmem>>, vector<9x256xf32>
    %15 = vector.extract_strided_slice %14 {offsets = [0, 0], sizes = [1, 256], strides = [1, 1]} : vector<9x256xf32> to vector<1x256xf32>
    %16 = vector.extract_strided_slice %14 {offsets = [1, 0], sizes = [1, 256], strides = [1, 1]} : vector<9x256xf32> to vector<1x256xf32>
    %17 = vector.extract_strided_slice %14 {offsets = [2, 0], sizes = [1, 256], strides = [1, 1]} : vector<9x256xf32> to vector<1x256xf32>
    %18 = vector.extract_strided_slice %14 {offsets = [3, 0], sizes = [1, 256], strides = [1, 1]} : vector<9x256xf32> to vector<1x256xf32>
    %19 = vector.extract_strided_slice %14 {offsets = [5, 0], sizes = [1, 256], strides = [1, 1]} : vector<9x256xf32> to vector<1x256xf32>
    %20 = vector.extract_strided_slice %14 {offsets = [6, 0], sizes = [1, 256], strides = [1, 1]} : vector<9x256xf32> to vector<1x256xf32>
    %21 = vector.extract_strided_slice %14 {offsets = [7, 0], sizes = [1, 256], strides = [1, 1]} : vector<9x256xf32> to vector<1x256xf32>
    %22 = vector.extract_strided_slice %14 {offsets = [8, 0], sizes = [1, 256], strides = [1, 1]} : vector<9x256xf32> to vector<1x256xf32>
    %c17_i32 = arith.constant 17 : i32
    %23 = tpu.dynamic_rotate %8 by %c17_i32 dim 1 : vector<20x256xf32>, i32 -> vector<20x256xf32>
    %24 = vector.broadcast %15 : vector<1x256xf32> to vector<20x256xf32>
    %25 = arith.mulf %23, %24 : vector<20x256xf32>
    %c0_19 = arith.constant 0 : index
    %c0_20 = arith.constant 0 : index
    %c0_21 = arith.constant 0 : index
    %26 = vector.load %arg8[%c0_19, %c0_20, %c0_21] : memref<9x48x20xbf16, #tpu.memory_space<vmem>>, vector<1x48x20xbf16>
    %27 = vector.shape_cast %26 : vector<1x48x20xbf16> to vector<48x20xbf16>
    %28 = arith.truncf %25 : vector<20x256xf32> to vector<20x256xbf16>
    %cst = arith.constant dense<0.000000e+00> : vector<48x256xf32>
    %29 = tpu.matmul %27, %28, %cst {dimension_numbers = #tpu.dot_dimension_numbers<[1], [0], [0], [1], [0, 0, 1, 1], [], []>} : vector<48x20xbf16>, vector<20x256xbf16>, vector<48x256xf32> -> vector<48x256xf32>
    %c16_i32 = arith.constant 16 : i32
    %30 = tpu.dynamic_rotate %8 by %c16_i32 dim 1 : vector<20x256xf32>, i32 -> vector<20x256xf32>
    %31 = vector.broadcast %16 : vector<1x256xf32> to vector<20x256xf32>
    %32 = arith.mulf %30, %31 : vector<20x256xf32>
    %c1 = arith.constant 1 : index
    %c0_22 = arith.constant 0 : index
    %c0_23 = arith.constant 0 : index
    %33 = vector.load %arg8[%c1, %c0_22, %c0_23] : memref<9x48x20xbf16, #tpu.memory_space<vmem>>, vector<1x48x20xbf16>
    %34 = vector.shape_cast %33 : vector<1x48x20xbf16> to vector<48x20xbf16>
    %35 = arith.truncf %32 : vector<20x256xf32> to vector<20x256xbf16>
    %cst_24 = arith.constant dense<0.000000e+00> : vector<48x256xf32>
    %36 = tpu.matmul %34, %35, %cst_24 {dimension_numbers = #tpu.dot_dimension_numbers<[1], [0], [0], [1], [0, 0, 1, 1], [], []>} : vector<48x20xbf16>, vector<20x256xbf16>, vector<48x256xf32> -> vector<48x256xf32>
    %37 = arith.addf %29, %36 : vector<48x256xf32>
    %c15_i32 = arith.constant 15 : i32
    %38 = tpu.dynamic_rotate %8 by %c15_i32 dim 1 : vector<20x256xf32>, i32 -> vector<20x256xf32>
    %39 = vector.broadcast %17 : vector<1x256xf32> to vector<20x256xf32>
    %40 = arith.mulf %38, %39 : vector<20x256xf32>
    %c2 = arith.constant 2 : index
    %c0_25 = arith.constant 0 : index
    %c0_26 = arith.constant 0 : index
    %41 = vector.load %arg8[%c2, %c0_25, %c0_26] : memref<9x48x20xbf16, #tpu.memory_space<vmem>>, vector<1x48x20xbf16>
    %42 = vector.shape_cast %41 : vector<1x48x20xbf16> to vector<48x20xbf16>
    %43 = arith.truncf %40 : vector<20x256xf32> to vector<20x256xbf16>
    %cst_27 = arith.constant dense<0.000000e+00> : vector<48x256xf32>
    %44 = tpu.matmul %42, %43, %cst_27 {dimension_numbers = #tpu.dot_dimension_numbers<[1], [0], [0], [1], [0, 0, 1, 1], [], []>} : vector<48x20xbf16>, vector<20x256xbf16>, vector<48x256xf32> -> vector<48x256xf32>
    %45 = arith.addf %37, %44 : vector<48x256xf32>
    %c1_i32 = arith.constant 1 : i32
    %46 = tpu.dynamic_rotate %8 by %c1_i32 dim 1 : vector<20x256xf32>, i32 -> vector<20x256xf32>
    %47 = vector.broadcast %18 : vector<1x256xf32> to vector<20x256xf32>
    %48 = arith.mulf %46, %47 : vector<20x256xf32>
    %c3 = arith.constant 3 : index
    %c0_28 = arith.constant 0 : index
    %c0_29 = arith.constant 0 : index
    %49 = vector.load %arg8[%c3, %c0_28, %c0_29] : memref<9x48x20xbf16, #tpu.memory_space<vmem>>, vector<1x48x20xbf16>
    %50 = vector.shape_cast %49 : vector<1x48x20xbf16> to vector<48x20xbf16>
    %51 = arith.truncf %48 : vector<20x256xf32> to vector<20x256xbf16>
    %cst_30 = arith.constant dense<0.000000e+00> : vector<48x256xf32>
    %52 = tpu.matmul %50, %51, %cst_30 {dimension_numbers = #tpu.dot_dimension_numbers<[1], [0], [0], [1], [0, 0, 1, 1], [], []>} : vector<48x20xbf16>, vector<20x256xbf16>, vector<48x256xf32> -> vector<48x256xf32>
    %53 = arith.addf %45, %52 : vector<48x256xf32>
    %c4 = arith.constant 4 : index
    %c0_31 = arith.constant 0 : index
    %c0_32 = arith.constant 0 : index
    %54 = vector.load %arg8[%c4, %c0_31, %c0_32] : memref<9x48x20xbf16, #tpu.memory_space<vmem>>, vector<1x48x20xbf16>
    %55 = vector.shape_cast %54 : vector<1x48x20xbf16> to vector<48x20xbf16>
    %56 = arith.truncf %8 : vector<20x256xf32> to vector<20x256xbf16>
    %cst_33 = arith.constant dense<0.000000e+00> : vector<48x256xf32>
    %57 = tpu.matmul %55, %56, %cst_33 {dimension_numbers = #tpu.dot_dimension_numbers<[1], [0], [0], [1], [0, 0, 1, 1], [], []>} : vector<48x20xbf16>, vector<20x256xbf16>, vector<48x256xf32> -> vector<48x256xf32>
    %58 = arith.addf %53, %57 : vector<48x256xf32>
    %c255_i32 = arith.constant 255 : i32
    %59 = tpu.dynamic_rotate %8 by %c255_i32 dim 1 : vector<20x256xf32>, i32 -> vector<20x256xf32>
    %60 = vector.broadcast %19 : vector<1x256xf32> to vector<20x256xf32>
    %61 = arith.mulf %59, %60 : vector<20x256xf32>
    %c5 = arith.constant 5 : index
    %c0_34 = arith.constant 0 : index
    %c0_35 = arith.constant 0 : index
    %62 = vector.load %arg8[%c5, %c0_34, %c0_35] : memref<9x48x20xbf16, #tpu.memory_space<vmem>>, vector<1x48x20xbf16>
    %63 = vector.shape_cast %62 : vector<1x48x20xbf16> to vector<48x20xbf16>
    %64 = arith.truncf %61 : vector<20x256xf32> to vector<20x256xbf16>
    %cst_36 = arith.constant dense<0.000000e+00> : vector<48x256xf32>
    %65 = tpu.matmul %63, %64, %cst_36 {dimension_numbers = #tpu.dot_dimension_numbers<[1], [0], [0], [1], [0, 0, 1, 1], [], []>} : vector<48x20xbf16>, vector<20x256xbf16>, vector<48x256xf32> -> vector<48x256xf32>
    %66 = arith.addf %58, %65 : vector<48x256xf32>
    %c241_i32 = arith.constant 241 : i32
    %67 = tpu.dynamic_rotate %8 by %c241_i32 dim 1 : vector<20x256xf32>, i32 -> vector<20x256xf32>
    %68 = vector.broadcast %20 : vector<1x256xf32> to vector<20x256xf32>
    %69 = arith.mulf %67, %68 : vector<20x256xf32>
    %c6 = arith.constant 6 : index
    %c0_37 = arith.constant 0 : index
    %c0_38 = arith.constant 0 : index
    %70 = vector.load %arg8[%c6, %c0_37, %c0_38] : memref<9x48x20xbf16, #tpu.memory_space<vmem>>, vector<1x48x20xbf16>
    %71 = vector.shape_cast %70 : vector<1x48x20xbf16> to vector<48x20xbf16>
    %72 = arith.truncf %69 : vector<20x256xf32> to vector<20x256xbf16>
    %cst_39 = arith.constant dense<0.000000e+00> : vector<48x256xf32>
    %73 = tpu.matmul %71, %72, %cst_39 {dimension_numbers = #tpu.dot_dimension_numbers<[1], [0], [0], [1], [0, 0, 1, 1], [], []>} : vector<48x20xbf16>, vector<20x256xbf16>, vector<48x256xf32> -> vector<48x256xf32>
    %74 = arith.addf %66, %73 : vector<48x256xf32>
    %c240_i32 = arith.constant 240 : i32
    %75 = tpu.dynamic_rotate %8 by %c240_i32 dim 1 : vector<20x256xf32>, i32 -> vector<20x256xf32>
    %76 = vector.broadcast %21 : vector<1x256xf32> to vector<20x256xf32>
    %77 = arith.mulf %75, %76 : vector<20x256xf32>
    %c7 = arith.constant 7 : index
    %c0_40 = arith.constant 0 : index
    %c0_41 = arith.constant 0 : index
    %78 = vector.load %arg8[%c7, %c0_40, %c0_41] : memref<9x48x20xbf16, #tpu.memory_space<vmem>>, vector<1x48x20xbf16>
    %79 = vector.shape_cast %78 : vector<1x48x20xbf16> to vector<48x20xbf16>
    %80 = arith.truncf %77 : vector<20x256xf32> to vector<20x256xbf16>
    %cst_42 = arith.constant dense<0.000000e+00> : vector<48x256xf32>
    %81 = tpu.matmul %79, %80, %cst_42 {dimension_numbers = #tpu.dot_dimension_numbers<[1], [0], [0], [1], [0, 0, 1, 1], [], []>} : vector<48x20xbf16>, vector<20x256xbf16>, vector<48x256xf32> -> vector<48x256xf32>
    %82 = arith.addf %74, %81 : vector<48x256xf32>
    %c239_i32 = arith.constant 239 : i32
    %83 = tpu.dynamic_rotate %8 by %c239_i32 dim 1 : vector<20x256xf32>, i32 -> vector<20x256xf32>
    %84 = vector.broadcast %22 : vector<1x256xf32> to vector<20x256xf32>
    %85 = arith.mulf %83, %84 : vector<20x256xf32>
    %c8 = arith.constant 8 : index
    %c0_43 = arith.constant 0 : index
    %c0_44 = arith.constant 0 : index
    %86 = vector.load %arg8[%c8, %c0_43, %c0_44] : memref<9x48x20xbf16, #tpu.memory_space<vmem>>, vector<1x48x20xbf16>
    %87 = vector.shape_cast %86 : vector<1x48x20xbf16> to vector<48x20xbf16>
    %88 = arith.truncf %85 : vector<20x256xf32> to vector<20x256xbf16>
    %cst_45 = arith.constant dense<0.000000e+00> : vector<48x256xf32>
    %89 = tpu.matmul %87, %88, %cst_45 {dimension_numbers = #tpu.dot_dimension_numbers<[1], [0], [0], [1], [0, 0, 1, 1], [], []>} : vector<48x20xbf16>, vector<20x256xbf16>, vector<48x256xf32> -> vector<48x256xf32>
    %90 = arith.addf %82, %89 : vector<48x256xf32>
    %c0_46 = arith.constant 0 : index
    %c0_47 = arith.constant 0 : index
    %91 = vector.load %arg9[%c0_46, %c0_47] : memref<48x1xf32, #tpu.memory_space<vmem>>, vector<48x1xf32>
    %92 = vector.broadcast %91 : vector<48x1xf32> to vector<48x256xf32>
    %93 = arith.addf %90, %92 : vector<48x256xf32>
    %c17_i32_48 = arith.constant 17 : i32
    %94 = tpu.dynamic_rotate %13 by %c17_i32_48 dim 1 : vector<24x256xf32>, i32 -> vector<24x256xf32>
    %95 = vector.broadcast %15 : vector<1x256xf32> to vector<24x256xf32>
    %96 = arith.mulf %94, %95 : vector<24x256xf32>
    %c0_49 = arith.constant 0 : index
    %c0_50 = arith.constant 0 : index
    %c0_51 = arith.constant 0 : index
    %97 = vector.load %arg10[%c0_49, %c0_50, %c0_51] : memref<9x32x24xbf16, #tpu.memory_space<vmem>>, vector<1x32x24xbf16>
    %98 = vector.shape_cast %97 : vector<1x32x24xbf16> to vector<32x24xbf16>
    %99 = arith.truncf %96 : vector<24x256xf32> to vector<24x256xbf16>
    %cst_52 = arith.constant dense<0.000000e+00> : vector<32x256xf32>
    %100 = tpu.matmul %98, %99, %cst_52 {dimension_numbers = #tpu.dot_dimension_numbers<[1], [0], [0], [1], [0, 0, 1, 1], [], []>} : vector<32x24xbf16>, vector<24x256xbf16>, vector<32x256xf32> -> vector<32x256xf32>
    %c16_i32_53 = arith.constant 16 : i32
    %101 = tpu.dynamic_rotate %13 by %c16_i32_53 dim 1 : vector<24x256xf32>, i32 -> vector<24x256xf32>
    %102 = vector.broadcast %16 : vector<1x256xf32> to vector<24x256xf32>
    %103 = arith.mulf %101, %102 : vector<24x256xf32>
    %c1_54 = arith.constant 1 : index
    %c0_55 = arith.constant 0 : index
    %c0_56 = arith.constant 0 : index
    %104 = vector.load %arg10[%c1_54, %c0_55, %c0_56] : memref<9x32x24xbf16, #tpu.memory_space<vmem>>, vector<1x32x24xbf16>
    %105 = vector.shape_cast %104 : vector<1x32x24xbf16> to vector<32x24xbf16>
    %106 = arith.truncf %103 : vector<24x256xf32> to vector<24x256xbf16>
    %cst_57 = arith.constant dense<0.000000e+00> : vector<32x256xf32>
    %107 = tpu.matmul %105, %106, %cst_57 {dimension_numbers = #tpu.dot_dimension_numbers<[1], [0], [0], [1], [0, 0, 1, 1], [], []>} : vector<32x24xbf16>, vector<24x256xbf16>, vector<32x256xf32> -> vector<32x256xf32>
    %108 = arith.addf %100, %107 : vector<32x256xf32>
    %c15_i32_58 = arith.constant 15 : i32
    %109 = tpu.dynamic_rotate %13 by %c15_i32_58 dim 1 : vector<24x256xf32>, i32 -> vector<24x256xf32>
    %110 = vector.broadcast %17 : vector<1x256xf32> to vector<24x256xf32>
    %111 = arith.mulf %109, %110 : vector<24x256xf32>
    %c2_59 = arith.constant 2 : index
    %c0_60 = arith.constant 0 : index
    %c0_61 = arith.constant 0 : index
    %112 = vector.load %arg10[%c2_59, %c0_60, %c0_61] : memref<9x32x24xbf16, #tpu.memory_space<vmem>>, vector<1x32x24xbf16>
    %113 = vector.shape_cast %112 : vector<1x32x24xbf16> to vector<32x24xbf16>
    %114 = arith.truncf %111 : vector<24x256xf32> to vector<24x256xbf16>
    %cst_62 = arith.constant dense<0.000000e+00> : vector<32x256xf32>
    %115 = tpu.matmul %113, %114, %cst_62 {dimension_numbers = #tpu.dot_dimension_numbers<[1], [0], [0], [1], [0, 0, 1, 1], [], []>} : vector<32x24xbf16>, vector<24x256xbf16>, vector<32x256xf32> -> vector<32x256xf32>
    %116 = arith.addf %108, %115 : vector<32x256xf32>
    %c1_i32_63 = arith.constant 1 : i32
    %117 = tpu.dynamic_rotate %13 by %c1_i32_63 dim 1 : vector<24x256xf32>, i32 -> vector<24x256xf32>
    %118 = vector.broadcast %18 : vector<1x256xf32> to vector<24x256xf32>
    %119 = arith.mulf %117, %118 : vector<24x256xf32>
    %c3_64 = arith.constant 3 : index
    %c0_65 = arith.constant 0 : index
    %c0_66 = arith.constant 0 : index
    %120 = vector.load %arg10[%c3_64, %c0_65, %c0_66] : memref<9x32x24xbf16, #tpu.memory_space<vmem>>, vector<1x32x24xbf16>
    %121 = vector.shape_cast %120 : vector<1x32x24xbf16> to vector<32x24xbf16>
    %122 = arith.truncf %119 : vector<24x256xf32> to vector<24x256xbf16>
    %cst_67 = arith.constant dense<0.000000e+00> : vector<32x256xf32>
    %123 = tpu.matmul %121, %122, %cst_67 {dimension_numbers = #tpu.dot_dimension_numbers<[1], [0], [0], [1], [0, 0, 1, 1], [], []>} : vector<32x24xbf16>, vector<24x256xbf16>, vector<32x256xf32> -> vector<32x256xf32>
    %124 = arith.addf %116, %123 : vector<32x256xf32>
    %c4_68 = arith.constant 4 : index
    %c0_69 = arith.constant 0 : index
    %c0_70 = arith.constant 0 : index
    %125 = vector.load %arg10[%c4_68, %c0_69, %c0_70] : memref<9x32x24xbf16, #tpu.memory_space<vmem>>, vector<1x32x24xbf16>
    %126 = vector.shape_cast %125 : vector<1x32x24xbf16> to vector<32x24xbf16>
    %127 = arith.truncf %13 : vector<24x256xf32> to vector<24x256xbf16>
    %cst_71 = arith.constant dense<0.000000e+00> : vector<32x256xf32>
    %128 = tpu.matmul %126, %127, %cst_71 {dimension_numbers = #tpu.dot_dimension_numbers<[1], [0], [0], [1], [0, 0, 1, 1], [], []>} : vector<32x24xbf16>, vector<24x256xbf16>, vector<32x256xf32> -> vector<32x256xf32>
    %129 = arith.addf %124, %128 : vector<32x256xf32>
    %c255_i32_72 = arith.constant 255 : i32
    %130 = tpu.dynamic_rotate %13 by %c255_i32_72 dim 1 : vector<24x256xf32>, i32 -> vector<24x256xf32>
    %131 = vector.broadcast %19 : vector<1x256xf32> to vector<24x256xf32>
    %132 = arith.mulf %130, %131 : vector<24x256xf32>
    %c5_73 = arith.constant 5 : index
    %c0_74 = arith.constant 0 : index
    %c0_75 = arith.constant 0 : index
    %133 = vector.load %arg10[%c5_73, %c0_74, %c0_75] : memref<9x32x24xbf16, #tpu.memory_space<vmem>>, vector<1x32x24xbf16>
    %134 = vector.shape_cast %133 : vector<1x32x24xbf16> to vector<32x24xbf16>
    %135 = arith.truncf %132 : vector<24x256xf32> to vector<24x256xbf16>
    %cst_76 = arith.constant dense<0.000000e+00> : vector<32x256xf32>
    %136 = tpu.matmul %134, %135, %cst_76 {dimension_numbers = #tpu.dot_dimension_numbers<[1], [0], [0], [1], [0, 0, 1, 1], [], []>} : vector<32x24xbf16>, vector<24x256xbf16>, vector<32x256xf32> -> vector<32x256xf32>
    %137 = arith.addf %129, %136 : vector<32x256xf32>
    %c241_i32_77 = arith.constant 241 : i32
    %138 = tpu.dynamic_rotate %13 by %c241_i32_77 dim 1 : vector<24x256xf32>, i32 -> vector<24x256xf32>
    %139 = vector.broadcast %20 : vector<1x256xf32> to vector<24x256xf32>
    %140 = arith.mulf %138, %139 : vector<24x256xf32>
    %c6_78 = arith.constant 6 : index
    %c0_79 = arith.constant 0 : index
    %c0_80 = arith.constant 0 : index
    %141 = vector.load %arg10[%c6_78, %c0_79, %c0_80] : memref<9x32x24xbf16, #tpu.memory_space<vmem>>, vector<1x32x24xbf16>
    %142 = vector.shape_cast %141 : vector<1x32x24xbf16> to vector<32x24xbf16>
    %143 = arith.truncf %140 : vector<24x256xf32> to vector<24x256xbf16>
    %cst_81 = arith.constant dense<0.000000e+00> : vector<32x256xf32>
    %144 = tpu.matmul %142, %143, %cst_81 {dimension_numbers = #tpu.dot_dimension_numbers<[1], [0], [0], [1], [0, 0, 1, 1], [], []>} : vector<32x24xbf16>, vector<24x256xbf16>, vector<32x256xf32> -> vector<32x256xf32>
    %145 = arith.addf %137, %144 : vector<32x256xf32>
    %c240_i32_82 = arith.constant 240 : i32
    %146 = tpu.dynamic_rotate %13 by %c240_i32_82 dim 1 : vector<24x256xf32>, i32 -> vector<24x256xf32>
    %147 = vector.broadcast %21 : vector<1x256xf32> to vector<24x256xf32>
    %148 = arith.mulf %146, %147 : vector<24x256xf32>
    %c7_83 = arith.constant 7 : index
    %c0_84 = arith.constant 0 : index
    %c0_85 = arith.constant 0 : index
    %149 = vector.load %arg10[%c7_83, %c0_84, %c0_85] : memref<9x32x24xbf16, #tpu.memory_space<vmem>>, vector<1x32x24xbf16>
    %150 = vector.shape_cast %149 : vector<1x32x24xbf16> to vector<32x24xbf16>
    %151 = arith.truncf %148 : vector<24x256xf32> to vector<24x256xbf16>
    %cst_86 = arith.constant dense<0.000000e+00> : vector<32x256xf32>
    %152 = tpu.matmul %150, %151, %cst_86 {dimension_numbers = #tpu.dot_dimension_numbers<[1], [0], [0], [1], [0, 0, 1, 1], [], []>} : vector<32x24xbf16>, vector<24x256xbf16>, vector<32x256xf32> -> vector<32x256xf32>
    %153 = arith.addf %145, %152 : vector<32x256xf32>
    %c239_i32_87 = arith.constant 239 : i32
    %154 = tpu.dynamic_rotate %13 by %c239_i32_87 dim 1 : vector<24x256xf32>, i32 -> vector<24x256xf32>
    %155 = vector.broadcast %22 : vector<1x256xf32> to vector<24x256xf32>
    %156 = arith.mulf %154, %155 : vector<24x256xf32>
    %c8_88 = arith.constant 8 : index
    %c0_89 = arith.constant 0 : index
    %c0_90 = arith.constant 0 : index
    %157 = vector.load %arg10[%c8_88, %c0_89, %c0_90] : memref<9x32x24xbf16, #tpu.memory_space<vmem>>, vector<1x32x24xbf16>
    %158 = vector.shape_cast %157 : vector<1x32x24xbf16> to vector<32x24xbf16>
    %159 = arith.truncf %156 : vector<24x256xf32> to vector<24x256xbf16>
    %cst_91 = arith.constant dense<0.000000e+00> : vector<32x256xf32>
    %160 = tpu.matmul %158, %159, %cst_91 {dimension_numbers = #tpu.dot_dimension_numbers<[1], [0], [0], [1], [0, 0, 1, 1], [], []>} : vector<32x24xbf16>, vector<24x256xbf16>, vector<32x256xf32> -> vector<32x256xf32>
    %161 = arith.addf %153, %160 : vector<32x256xf32>
    %c0_92 = arith.constant 0 : index
    %c0_93 = arith.constant 0 : index
    %162 = vector.load %arg11[%c0_92, %c0_93] : memref<32x1xf32, #tpu.memory_space<vmem>>, vector<32x1xf32>
    %163 = vector.broadcast %162 : vector<32x1xf32> to vector<32x256xf32>
    %164 = arith.addf %161, %163 : vector<32x256xf32>
    %165 = vector.extract_strided_slice %93 {offsets = [0, 0], sizes = [8, 256], strides = [1, 1]} : vector<48x256xf32> to vector<8x256xf32>
    %cst_94 = arith.constant 5.000000e-01 : f32
    %166 = vector.broadcast %cst_94 : f32 to vector<8x256xf32>
    %167 = arith.mulf %166, %165 : vector<8x256xf32>
    %168 = math.tanh %167 : vector<8x256xf32>
    %cst_95 = arith.constant 5.000000e-01 : f32
    %169 = vector.broadcast %cst_95 : f32 to vector<8x256xf32>
    %170 = arith.mulf %169, %168 : vector<8x256xf32>
    %cst_96 = arith.constant 5.000000e-01 : f32
    %171 = vector.broadcast %cst_96 : f32 to vector<8x256xf32>
    %172 = arith.addf %170, %171 : vector<8x256xf32>
    %173 = vector.extract_strided_slice %93 {offsets = [8, 0], sizes = [8, 256], strides = [1, 1]} : vector<48x256xf32> to vector<8x256xf32>
    %cst_97 = arith.constant 5.000000e-01 : f32
    %174 = vector.broadcast %cst_97 : f32 to vector<8x256xf32>
    %175 = arith.mulf %174, %173 : vector<8x256xf32>
    %176 = math.tanh %175 : vector<8x256xf32>
    %cst_98 = arith.constant 5.000000e-01 : f32
    %177 = vector.broadcast %cst_98 : f32 to vector<8x256xf32>
    %178 = arith.mulf %177, %176 : vector<8x256xf32>
    %cst_99 = arith.constant 5.000000e-01 : f32
    %179 = vector.broadcast %cst_99 : f32 to vector<8x256xf32>
    %180 = arith.addf %178, %179 : vector<8x256xf32>
    %181 = vector.extract_strided_slice %93 {offsets = [16, 0], sizes = [8, 256], strides = [1, 1]} : vector<48x256xf32> to vector<8x256xf32>
    %182 = math.tanh %181 : vector<8x256xf32>
    %183 = vector.extract_strided_slice %93 {offsets = [24, 0], sizes = [8, 256], strides = [1, 1]} : vector<48x256xf32> to vector<8x256xf32>
    %184 = math.tanh %183 : vector<8x256xf32>
    %185 = vector.extract_strided_slice %93 {offsets = [32, 0], sizes = [8, 256], strides = [1, 1]} : vector<48x256xf32> to vector<8x256xf32>
    %cst_100 = arith.constant 5.000000e-01 : f32
    %186 = vector.broadcast %cst_100 : f32 to vector<8x256xf32>
    %187 = arith.mulf %186, %185 : vector<8x256xf32>
    %188 = math.tanh %187 : vector<8x256xf32>
    %cst_101 = arith.constant 5.000000e-01 : f32
    %189 = vector.broadcast %cst_101 : f32 to vector<8x256xf32>
    %190 = arith.mulf %189, %188 : vector<8x256xf32>
    %cst_102 = arith.constant 5.000000e-01 : f32
    %191 = vector.broadcast %cst_102 : f32 to vector<8x256xf32>
    %192 = arith.addf %190, %191 : vector<8x256xf32>
    %193 = vector.extract_strided_slice %93 {offsets = [40, 0], sizes = [8, 256], strides = [1, 1]} : vector<48x256xf32> to vector<8x256xf32>
    %cst_103 = arith.constant 5.000000e-01 : f32
    %194 = vector.broadcast %cst_103 : f32 to vector<8x256xf32>
    %195 = arith.mulf %194, %193 : vector<8x256xf32>
    %196 = math.tanh %195 : vector<8x256xf32>
    %cst_104 = arith.constant 5.000000e-01 : f32
    %197 = vector.broadcast %cst_104 : f32 to vector<8x256xf32>
    %198 = arith.mulf %197, %196 : vector<8x256xf32>
    %cst_105 = arith.constant 5.000000e-01 : f32
    %199 = vector.broadcast %cst_105 : f32 to vector<8x256xf32>
    %200 = arith.addf %198, %199 : vector<8x256xf32>
    %201 = arith.mulf %192, %1 : vector<8x256xf32>
    %202 = arith.mulf %180, %184 : vector<8x256xf32>
    %203 = arith.addf %201, %202 : vector<8x256xf32>
    %204 = vector.extract_strided_slice %164 {offsets = [0, 0], sizes = [8, 256], strides = [1, 1]} : vector<32x256xf32> to vector<8x256xf32>
    %cst_106 = arith.constant 5.000000e-01 : f32
    %205 = vector.broadcast %cst_106 : f32 to vector<8x256xf32>
    %206 = arith.mulf %205, %204 : vector<8x256xf32>
    %207 = math.tanh %206 : vector<8x256xf32>
    %cst_107 = arith.constant 5.000000e-01 : f32
    %208 = vector.broadcast %cst_107 : f32 to vector<8x256xf32>
    %209 = arith.mulf %208, %207 : vector<8x256xf32>
    %cst_108 = arith.constant 5.000000e-01 : f32
    %210 = vector.broadcast %cst_108 : f32 to vector<8x256xf32>
    %211 = arith.addf %209, %210 : vector<8x256xf32>
    %212 = vector.extract_strided_slice %164 {offsets = [8, 0], sizes = [8, 256], strides = [1, 1]} : vector<32x256xf32> to vector<8x256xf32>
    %213 = math.tanh %212 : vector<8x256xf32>
    %214 = vector.extract_strided_slice %164 {offsets = [16, 0], sizes = [8, 256], strides = [1, 1]} : vector<32x256xf32> to vector<8x256xf32>
    %cst_109 = arith.constant 5.000000e-01 : f32
    %215 = vector.broadcast %cst_109 : f32 to vector<8x256xf32>
    %216 = arith.mulf %215, %214 : vector<8x256xf32>
    %217 = math.tanh %216 : vector<8x256xf32>
    %cst_110 = arith.constant 5.000000e-01 : f32
    %218 = vector.broadcast %cst_110 : f32 to vector<8x256xf32>
    %219 = arith.mulf %218, %217 : vector<8x256xf32>
    %cst_111 = arith.constant 5.000000e-01 : f32
    %220 = vector.broadcast %cst_111 : f32 to vector<8x256xf32>
    %221 = arith.addf %219, %220 : vector<8x256xf32>
    %222 = vector.extract_strided_slice %164 {offsets = [24, 0], sizes = [8, 256], strides = [1, 1]} : vector<32x256xf32> to vector<8x256xf32>
    %cst_112 = arith.constant 5.000000e-01 : f32
    %223 = vector.broadcast %cst_112 : f32 to vector<8x256xf32>
    %224 = arith.mulf %223, %222 : vector<8x256xf32>
    %225 = math.tanh %224 : vector<8x256xf32>
    %cst_113 = arith.constant 5.000000e-01 : f32
    %226 = vector.broadcast %cst_113 : f32 to vector<8x256xf32>
    %227 = arith.mulf %226, %225 : vector<8x256xf32>
    %cst_114 = arith.constant 5.000000e-01 : f32
    %228 = vector.broadcast %cst_114 : f32 to vector<8x256xf32>
    %229 = arith.addf %227, %228 : vector<8x256xf32>
    %230 = arith.mulf %221, %3 : vector<8x256xf32>
    %231 = arith.mulf %211, %213 : vector<8x256xf32>
    %232 = arith.addf %230, %231 : vector<8x256xf32>
    %233 = math.tanh %232 : vector<8x256xf32>
    %234 = arith.mulf %229, %233 : vector<8x256xf32>
    %235 = arith.mulf %172, %182 : vector<8x256xf32>
    %236 = arith.addf %234, %235 : vector<8x256xf32>
    %237 = tpu.concatenate %236, %203 in 0 : vector<8x256xf32>, vector<8x256xf32> -> vector<16x256xf32>
    %238 = arith.truncf %237 : vector<16x256xf32> to vector<16x256xbf16>
    %c0_115 = arith.constant 0 : index
    %c0_116 = arith.constant 0 : index
    %239 = vector.load %arg12[%c0_115, %c0_116] : memref<8x16xbf16, #tpu.memory_space<vmem>>, vector<8x16xbf16>
    %cst_117 = arith.constant dense<0.000000e+00> : vector<8x256xf32>
    %240 = tpu.matmul %239, %238, %cst_117 {dimension_numbers = #tpu.dot_dimension_numbers<[1], [0], [0], [1], [0, 0, 1, 1], [], []>} : vector<8x16xbf16>, vector<16x256xbf16>, vector<8x256xf32> -> vector<8x256xf32>
    %c0_118 = arith.constant 0 : index
    %c0_119 = arith.constant 0 : index
    %241 = vector.load %arg13[%c0_118, %c0_119] : memref<8x1xf32, #tpu.memory_space<vmem>>, vector<8x1xf32>
    %242 = vector.broadcast %241 : vector<8x1xf32> to vector<8x256xf32>
    %243 = arith.addf %240, %242 : vector<8x256xf32>
    %244 = math.tanh %243 : vector<8x256xf32>
    %245 = arith.mulf %200, %244 : vector<8x256xf32>
    %c0_120 = arith.constant 0 : index
    %c0_121 = arith.constant 0 : index
    %c0_122 = arith.constant 0 : index
    %246 = vector.load %arg14[%c0_120, %c0_121, %c0_122] : memref<1x8x256xf32, #tpu.memory_space<vmem>>, vector<1x8x256xf32>
    %247 = vector.shape_cast %246 : vector<1x8x256xf32> to vector<8x256xf32>
    %248 = vector.shape_cast %245 : vector<8x256xf32> to vector<1x8x256xf32>
    tpu.vector_store %arg14[%c0_120, %c0_121, %c0_122], %248 {strides = array<i32>} : memref<1x8x256xf32, #tpu.memory_space<vmem>>, vector<1x8x256xf32>,
    %c0_123 = arith.constant 0 : index
    %c0_124 = arith.constant 0 : index
    %c0_125 = arith.constant 0 : index
    %249 = vector.load %arg15[%c0_123, %c0_124, %c0_125] : memref<1x8x256xf32, #tpu.memory_space<vmem>>, vector<1x8x256xf32>
    %250 = vector.shape_cast %249 : vector<1x8x256xf32> to vector<8x256xf32>
    %251 = vector.shape_cast %236 : vector<8x256xf32> to vector<1x8x256xf32>
    tpu.vector_store %arg15[%c0_123, %c0_124, %c0_125], %251 {strides = array<i32>} : memref<1x8x256xf32, #tpu.memory_space<vmem>>, vector<1x8x256xf32>,
    %c0_126 = arith.constant 0 : index
    %c0_127 = arith.constant 0 : index
    %c0_128 = arith.constant 0 : index
    %252 = vector.load %arg16[%c0_126, %c0_127, %c0_128] : memref<1x8x256xf32, #tpu.memory_space<vmem>>, vector<1x8x256xf32>
    %253 = vector.shape_cast %252 : vector<1x8x256xf32> to vector<8x256xf32>
    %254 = vector.shape_cast %203 : vector<8x256xf32> to vector<1x8x256xf32>
    tpu.vector_store %arg16[%c0_126, %c0_127, %c0_128], %254 {strides = array<i32>} : memref<1x8x256xf32, #tpu.memory_space<vmem>>, vector<1x8x256xf32>,
    %c0_129 = arith.constant 0 : index
    %c0_130 = arith.constant 0 : index
    %c0_131 = arith.constant 0 : index
    %255 = vector.load %arg17[%c0_129, %c0_130, %c0_131] : memref<1x8x256xf32, #tpu.memory_space<vmem>>, vector<1x8x256xf32>
    %256 = vector.shape_cast %255 : vector<1x8x256xf32> to vector<8x256xf32>
    %257 = vector.shape_cast %232 : vector<8x256xf32> to vector<1x8x256xf32>
    tpu.vector_store %arg17[%c0_129, %c0_130, %c0_131], %257 {strides = array<i32>} : memref<1x8x256xf32, #tpu.memory_space<vmem>>, vector<1x8x256xf32>,
    return
  }
  func.func @transform_0(%arg0: i32) -> (i32, i32, i32) {
    %c0_i32 = arith.constant 0 : i32
    %c0_i32_0 = arith.constant 0 : i32
    %c0_i32_1 = arith.constant 0 : i32
    return %arg0, %c0_i32, %c0_i32_0 : i32, i32, i32
  }
  func.func @transform_1(%arg0: i32) -> (i32, i32, i32) {
    %c0_i32 = arith.constant 0 : i32
    %c0_i32_0 = arith.constant 0 : i32
    %c0_i32_1 = arith.constant 0 : i32
    return %arg0, %c0_i32, %c0_i32_0 : i32, i32, i32
  }
  func.func @transform_2(%arg0: i32) -> (i32, i32, i32) {
    %c0_i32 = arith.constant 0 : i32
    %c0_i32_0 = arith.constant 0 : i32
    %c0_i32_1 = arith.constant 0 : i32
    return %arg0, %c0_i32, %c0_i32_0 : i32, i32, i32
  }
  func.func @transform_3(%arg0: i32) -> (i32, i32, i32) {
    %c0_i32 = arith.constant 0 : i32
    %c0_i32_0 = arith.constant 0 : i32
    %c0_i32_1 = arith.constant 0 : i32
    return %arg0, %c0_i32, %c0_i32_0 : i32, i32, i32
  }
  func.func @transform_4(%arg0: i32) -> (i32, i32, i32) {
    %c0_i32 = arith.constant 0 : i32
    %c0_i32_0 = arith.constant 0 : i32
    %c0_i32_1 = arith.constant 0 : i32
    return %arg0, %c0_i32, %c0_i32_0 : i32, i32, i32
  }
  func.func @transform_5(%arg0: i32) -> (i32, i32, i32) {
    %c0_i32 = arith.constant 0 : i32
    %c0_i32_0 = arith.constant 0 : i32
    %c0_i32_1 = arith.constant 0 : i32
    return %arg0, %c0_i32, %c0_i32_0 : i32, i32, i32
  }
  func.func @transform_6(%arg0: i32) -> (i32, i32) {
    %c0_i32 = arith.constant 0 : i32
    %c0_i32_0 = arith.constant 0 : i32
    %c0_i32_1 = arith.constant 0 : i32
    return %c0_i32, %c0_i32_0 : i32, i32
  }
  func.func @transform_7(%arg0: i32) -> (i32, i32, i32) {
    %c0_i32 = arith.constant 0 : i32
    %c0_i32_0 = arith.constant 0 : i32
    %c0_i32_1 = arith.constant 0 : i32
    %c0_i32_2 = arith.constant 0 : i32
    return %c0_i32, %c0_i32_0, %c0_i32_1 : i32, i32, i32
  }
  func.func @transform_8(%arg0: i32) -> (i32, i32) {
    %c0_i32 = arith.constant 0 : i32
    %c0_i32_0 = arith.constant 0 : i32
    %c0_i32_1 = arith.constant 0 : i32
    return %c0_i32, %c0_i32_0 : i32, i32
  }
  func.func @transform_9(%arg0: i32) -> (i32, i32, i32) {
    %c0_i32 = arith.constant 0 : i32
    %c0_i32_0 = arith.constant 0 : i32
    %c0_i32_1 = arith.constant 0 : i32
    %c0_i32_2 = arith.constant 0 : i32
    return %c0_i32, %c0_i32_0, %c0_i32_1 : i32, i32, i32
  }
  func.func @transform_10(%arg0: i32) -> (i32, i32) {
    %c0_i32 = arith.constant 0 : i32
    %c0_i32_0 = arith.constant 0 : i32
    %c0_i32_1 = arith.constant 0 : i32
    return %c0_i32, %c0_i32_0 : i32, i32
  }
  func.func @transform_11(%arg0: i32) -> (i32, i32) {
    %c0_i32 = arith.constant 0 : i32
    %c0_i32_0 = arith.constant 0 : i32
    %c0_i32_1 = arith.constant 0 : i32
    return %c0_i32, %c0_i32_0 : i32, i32
  }
  func.func @transform_12(%arg0: i32) -> (i32, i32) {
    %c0_i32 = arith.constant 0 : i32
    %c0_i32_0 = arith.constant 0 : i32
    %c0_i32_1 = arith.constant 0 : i32
    return %c0_i32, %c0_i32_0 : i32, i32
  }
  func.func @transform_13(%arg0: i32) -> (i32, i32, i32) {
    %c0_i32 = arith.constant 0 : i32
    %c0_i32_0 = arith.constant 0 : i32
    %c0_i32_1 = arith.constant 0 : i32
    return %arg0, %c0_i32, %c0_i32_0 : i32, i32, i32
  }
  func.func @transform_14(%arg0: i32) -> (i32, i32, i32) {
    %c0_i32 = arith.constant 0 : i32
    %c0_i32_0 = arith.constant 0 : i32
    %c0_i32_1 = arith.constant 0 : i32
    return %arg0, %c0_i32, %c0_i32_0 : i32, i32, i32
  }
  func.func @transform_15(%arg0: i32) -> (i32, i32, i32) {
    %c0_i32 = arith.constant 0 : i32
    %c0_i32_0 = arith.constant 0 : i32
    %c0_i32_1 = arith.constant 0 : i32
    return %arg0, %c0_i32, %c0_i32_0 : i32, i32, i32
  }
  func.func @transform_16(%arg0: i32) -> (i32, i32, i32) {
    %c0_i32 = arith.constant 0 : i32
    %c0_i32_0 = arith.constant 0 : i32
    %c0_i32_1 = arith.constant 0 : i32
    return %arg0, %c0_i32, %c0_i32_0 : i32, i32, i32
  }
}

</mosaic_0001>

<bundles_post_ra>
// kernel: _mim_forward.1
= control target key start
LH: loop header
LB: loop body
LE: loop exit
PB: predicated region body
PF: predicated region fallthrough
CT: control target
= control target key end

     0   :  { %s4039_s21 = smov 0   ;;  %s5002_s0 = inlined_call_operand.vmem [shape: f32[2,4,256], index: 0, kind: input, shape index: {}]   ;;  %s5003_s1 = inlined_call_operand.vmem [shape: f32[2,8,256], index: 1, kind: input, shape index: {}]   ;;  %s5004_s2 = inlined_call_operand.vmem [shape: f32[2,8,256], index: 2, kind: input, shape index: {}]   ;;  %s5005_s3 = inlined_call_operand.vmem [shape: f32[2,8,256], index: 3, kind: input, shape index: {}]   ;;  %s5006_s4 = inlined_call_operand.vmem [shape: f32[2,8,256], index: 4, kind: input, shape index: {}]   ;;  %s5007_s5 = inlined_call_operand.vmem [shape: f32[2,8,256], index: 5, kind: input, shape index: {}]   ;;  %s5008_s6 = inlined_call_operand.vmem [shape: f32[9,256], index: 6, kind: input, shape index: {}]   ;;  %s5009_s7 = inlined_call_operand.vmem [shape: bf16[9,48,20], index: 7, kind: input, shape index: {}]   ;;  %s5010_s8 = inlined_call_operand.vmem [shape: f32[48,1], index: 8, kind: input, shape index: {}]   ;;  %s5011_s9 = inlined_call_operand.vmem [shape: bf16[9,32,24], index: 9, kind: input, shape index: {}]   ;;  %s5012_s10 = inlined_call_operand.vmem [shape: f32[32,1], index: 10, kind: input, shape index: {}]   ;;  %s5013_s11 = inlined_call_operand.vmem [shape: bf16[8,16], index: 11, kind: input, shape index: {}]   ;;  %s5014_s12 = inlined_call_operand.vmem [shape: f32[8,1], index: 12, kind: input, shape index: {}]   ;;  %s5015_s13 = inlined_call_operand.vmem [shape: f32[2,8,256], index: 13, kind: output, shape index: {0}]   ;;  %s5016_s14 = inlined_call_operand.vmem [shape: f32[2,8,256], index: 14, kind: output, shape index: {1}]   ;;  %s5017_s15 = inlined_call_operand.vmem [shape: f32[2,8,256], index: 15, kind: output, shape index: {2}]   ;;  %s5018_s16 = inlined_call_operand.vmem [shape: f32[2,8,256], index: 16, kind: output, shape index: {3}]  }
   0x1   :  { %5019 = sst [smem:[#allocation2_spill]] %s5002_s0 }
   0x2 LB: > { %s3428_s22 = sadd.s32 4294967295, %s3943_s21   ;;  %p3432_p0 = scmp.ge.s32.totalorder %s3943_s21, 1  ;;  %s3943_s21 = sphi %s4039_s21, %s27_s21  }
   0x3   : > { %p519_p1 = scmp.lt.s32.totalorder %s3943_s21, 3 }
   0x5   : > { %p520_p2 = pnand %p3432_p0, %p519_p1 }
   0x6   : > { %p609_p3 = scmp.lt.s32.totalorder (!%p520_p2), %s3428_s22, 1  ;;  %s5020_s30 = sld [smem:[#allocation2_spill]] (!%p520_p2)  ;;  %vm682_vm0 = vcmask (!%p520_p2), 1043456   ;;  %v3946_v14 = vmov (!%p520_p2), 0   ;;  %v707_v21 = vlaneseq (!%p520_p2)  ;;  %v4218_v27 = vld [vmem:[%s5008_s6 + $0x8] sm:$0xff] (!%p520_p2)  ;;  %v4223_v30 = vld [vmem:[%s5008_s6] sm:$0xff] (!%p520_p2) }
   0x7   : > { %523 = sbr.rel (%p520_p2) target bundleno = 824 (0x338), region = 72  ;;  %s3945_s20 = smov (!%p520_p2), 16   ;;  %848 = vmatprep.mubr.bf16.mxu1 (!%p520_p2), %v3946_v14  ;;  %941 = vmatprep.mubr.bf16.mxu0 (!%p520_p2), %v3946_v14  ;;  %vm809_vm3 = vcmask (!%p520_p2), 1041408   ;;  %vm799_vm4 = vcmask (!%p520_p2), 162816   ;;  %vm2105_vm7 = vcmask (!%p520_p2), 195584   ;;  %vm3157_vm12 = vcmask (!%p520_p2), 130048  }
   0x8   : > { %3838 = vset.pattern.permute.xlu1 (!%p520_p2), %v3946_v14  ;;  %3837 = vset.pattern.permute.xlu0 (!%p520_p2), %v3946_v14  ;;  %s3949_s25 = smov (!%p520_p2), 1   ;;  %v4208_v22 = vshrl.u32 (!%p520_p2), %v707_v21, 7  ;;  %v4210_v25 = vand.u32 (!%p520_p2), 127, %v707_v21  ;;  %s3951_s29 = smov (!%p520_p2), 113  }
   0xa   : > { %v761_v26 = vsub.s32 (!%p520_p2), 1, %v4208_v22  ;;  %vm752_vm1 = vcmp.lt.s32.totalorder (!%p520_p2), %v4210_v25, 16  ;;  %v718_v45 = vsub.s32 (!%p520_p2), 0, %v4208_v22  ;;  %vm709_vm2 = vcmp.lt.s32.totalorder (!%p520_p2), %v4210_v25, 17 }
   0xb   : > { %vm984_vm5 = vcmp.lt.s32.totalorder (!%p520_p2), %v4210_v25, 15  ;;  %vm1133_vm6 = vcmp.lt.s32.totalorder (!%p520_p2), %v4210_v25, 1  ;;  %vm1398_vm8 = vcmp.lt.s32.totalorder (!%p520_p2), %v4210_v25, 127  ;;  %vm1547_vm9 = vcmp.lt.s32.totalorder (!%p520_p2), %v4210_v25, 113 }
   0xc   : > { %v4233_v32 = vrot.slane (!%p520_p2), %v4218_v27, %v761_v26  ;;  %v4238_v34 = vrot.slane (!%p520_p2), %v4223_v30, %v761_v26  ;;  %v4265_v52 = vrot.slane (!%p520_p2), %v4223_v30, %v718_v45  ;;  %v4268_v53 = vrot.slane (!%p520_p2), %v4218_v27, %v718_v45 }
   0xd   : > { %vm1696_vm10 = vcmp.lt.s32.totalorder (!%p520_p2), %v4210_v25, 112  ;;  %vm1845_vm11 = vcmp.lt.s32.totalorder (!%p520_p2), %v4210_v25, 111  ;;  %v3881_v25 = vld [vmem:[%s5009_s7 + $0xc0] sm:$0xff] (!%p520_p2)  }
   0xe   : > { %s5022_s22 = smov (!%p609_p3, %s3428_s22), 1 }
   0xf   : > { %s4047_s23 = sshll.u32 %s5022_s22, 4  ;;  %s3646_s24 = sshll.u32 %s5022_s22, 3 }
  0x10   : > { %s4053_s27 = scalar_lea.vmem %s5004_s2, %s4047_s23  ;;  %s613_s0 = scalar_lea.vmem %s5020_s30, %s3646_s24 }
  0x11   : > { %v661_v0 = vld [vmem:[%s4053_s27 + $0x8] sm:$0xff]  ;;  %v660_v1 = vld [vmem:[%s4053_s27] sm:$0xff]  ;;  %s618_s19 = scalar_lea.vmem %s5003_s1, %s4047_s23  ;;  %s3947_s22 = smov 17  }
  0x12   : > { %v664_v2 = vld [vmem:[%s613_s0] sm:$0xff]  ;;  %v4064_v3 = vrot.slane %v661_v0, 4  ;;  %v4066_v4 = vrot.slane %v660_v1, 4  ;;  %v666_v7 = vld [vmem:[%s618_s19 + $0x8] sm:$0xff]  ;;  %s3948_s24 = smov 15   ;;  %s628_s28 = scalar_lea.vmem %s5005_s3, %s4047_s23 }
  0x13   : > { %v665_v5 = vld [vmem:[%s618_s19] sm:$0xff]  ;;  %v668_v6 = vcombine.high %v664_v2, %v664_v2  ;;  %v673_v9 = vrot.slane %v666_v7, 4  ;;  %s633_s0 = scalar_lea.vmem %s5006_s4, %s4047_s23  ;;  %v4138_v17 = vld [vmem:[%s628_s28 + $0x8] sm:$0xff]  ;;  %s4146_s19 = scalar_lea.vmem %s5007_s5, %s4047_s23 }
  0x14   : > { %v672_v8 = vrot.slane %v665_v5, 4  ;;  %750 = vrot.lane.b32.xlu1 %v4064_v3, %s3945_s20  ;;  %744 = vrot.lane.b32.xlu0 %v4066_v4, %s3945_s20  ;;  %v4126_v15 = vld [vmem:[%s628_s28] sm:$0xff]  ;;  %v4140_v18 = vld [vmem:[%s633_s0 + $0x8] sm:$0xff]  ;;  %s643_s26 = scalar_lea.vmem %s5015_s13, %s4047_s23 }
  0x15   : > { %v4076_v11 = vsel %vm682_vm0, %v668_v6, %v673_v9  ;;  %v4088_v13 = vsel %vm682_vm0, %v673_v9, %v4064_v3  ;;  %v4132_v16 = vld [vmem:[%s633_s0] sm:$0xff]  ;;  %v4156_v20 = vld [vmem:[%s4146_s19 + $0x8] sm:$0xff]  ;;  %s648_s0 = scalar_lea.vmem %s5016_s14, %s4047_s23 }
  0x16   : > { %v4073_v10 = vsel %vm682_vm0, %v664_v2, %v672_v8  ;;  %v4084_v12 = vsel %vm682_vm0, %v672_v8, %v4066_v4  ;;  %v4153_v19 = vld [vmem:[%s4146_s19] sm:$0xff]  ;;  %v3840_v2 = vld [vmem:[%s5009_s7 + $0x18] sm:$0xff]  }
  0x18   : > { %740 = vrot.lane.b32.xlu0 %v4073_v10, %s3945_s20  ;;  %746 = vrot.lane.b32.xlu1 %v4076_v11, %s3945_s20 }
  0x1c   : > { %742 = vrot.lane.b32.xlu0 %v4084_v12, %s3945_s20  ;;  %748 = vrot.lane.b32.xlu1 %v4088_v13, %s3945_s20 }
  0x20   : > { %695 = vrot.lane.b32.xlu0 %v4073_v10, %s3947_s22  ;;  %697 = vrot.lane.b32.xlu1 %v4084_v12, %s3947_s22 }
  0x24   : > { %701 = vrot.lane.b32.xlu0 %v4076_v11, %s3947_s22  ;;  %703 = vrot.lane.b32.xlu1 %v4088_v13, %s3947_s22 }
  0x28   : > { %699 = vrot.lane.b32.xlu0 %v4066_v4, %s3947_s22  ;;  %705 = vrot.lane.b32.xlu1 %v4064_v3, %s3947_s22 }
  0x2c   : > { %972 = vrot.lane.b32.xlu0 %v4073_v10, %s3948_s24  ;;  %974 = vrot.lane.b32.xlu1 %v4084_v12, %s3948_s24 }
  0x30   : > { %978 = vrot.lane.b32.xlu0 %v4076_v11, %s3948_s24  ;;  %980 = vrot.lane.b32.xlu1 %v4088_v13, %s3948_s24 }
  0x34   : > { %976 = vrot.lane.b32.xlu0 %v4066_v4, %s3948_s24  ;;  %982 = vrot.lane.b32.xlu1 %v4064_v3, %s3948_s24 }
  0x38   : > { %2062 = vrot.lane.b32.xlu0 %v4126_v15, %s3945_s20  ;;  %2064 = vrot.lane.b32.xlu1 %v4132_v16, %s3945_s20 }
  0x3c   : > { %2068 = vrot.lane.b32.xlu0 %v4138_v17, %s3945_s20  ;;  %2070 = vrot.lane.b32.xlu1 %v4140_v18, %s3945_s20 }
  0x40   : > { %2066 = vrot.lane.b32.xlu0 %v4153_v19, %s3945_s20  ;;  %2072 = vrot.lane.b32.xlu1 %v4156_v20, %s3945_s20  ;;  %s3950_s20 = smov 127  }
  0x44   : > { %1121 = vrot.lane.b32.xlu0 %v4073_v10, %s3949_s25  ;;  %1123 = vrot.lane.b32.xlu1 %v4084_v12, %s3949_s25 }
  0x48   : > { %1127 = vrot.lane.b32.xlu0 %v4076_v11, %s3949_s25  ;;  %1129 = vrot.lane.b32.xlu1 %v4088_v13, %s3949_s25 }
  0x4c   : > { %2030 = vrot.lane.b32.xlu0 %v4126_v15, %s3947_s22  ;;  %2032 = vrot.lane.b32.xlu1 %v4132_v16, %s3947_s22 }
  0x50   : > { %2036 = vrot.lane.b32.xlu0 %v4138_v17, %s3947_s22  ;;  %2038 = vrot.lane.b32.xlu1 %v4140_v18, %s3947_s22 }
  0x54   : > { %1125 = vrot.lane.b32.xlu0 %v4066_v4, %s3949_s25  ;;  %1131 = vrot.lane.b32.xlu1 %v4064_v3, %s3949_s25 }
  0x58   : > { %2034 = vrot.lane.b32.xlu0 %v4153_v19, %s3947_s22  ;;  %2040 = vrot.lane.b32.xlu1 %v4156_v20, %s3947_s22  ;;  %s3952_s22 = smov 112  }
  0x5c   : > { %2246 = vrot.lane.b32.xlu0 %v4126_v15, %s3948_s24  ;;  %2248 = vrot.lane.b32.xlu1 %v4132_v16, %s3948_s24 }
  0x60   : > { %2252 = vrot.lane.b32.xlu0 %v4138_v17, %s3948_s24  ;;  %2254 = vrot.lane.b32.xlu1 %v4140_v18, %s3948_s24 }
  0x64   : > { %2250 = vrot.lane.b32.xlu0 %v4153_v19, %s3948_s24  ;;  %2256 = vrot.lane.b32.xlu1 %v4156_v20, %s3948_s24 }
  0x68   : > { %2362 = vrot.lane.b32.xlu0 %v4126_v15, %s3949_s25  ;;  %2364 = vrot.lane.b32.xlu1 %v4132_v16, %s3949_s25 }
  0x6c   : > { %2368 = vrot.lane.b32.xlu0 %v4138_v17, %s3949_s25  ;;  %2370 = vrot.lane.b32.xlu1 %v4140_v18, %s3949_s25 }
  0x70   : > { %2366 = vrot.lane.b32.xlu0 %v4153_v19, %s3949_s25  ;;  %2372 = vrot.lane.b32.xlu1 %v4156_v20, %s3949_s25  ;;  %s653_s25 = scalar_lea.vmem %s5017_s15, %s4047_s23 }
  0x74   : > { %1386 = vrot.lane.b32.xlu0 %v4073_v10, %s3950_s20  ;;  %1388 = vrot.lane.b32.xlu1 %v4084_v12, %s3950_s20 }
  0x78   : > { %1392 = vrot.lane.b32.xlu0 %v4076_v11, %s3950_s20  ;;  %1394 = vrot.lane.b32.xlu1 %v4088_v13, %s3950_s20 }
  0x7c   : > { %1390 = vrot.lane.b32.xlu0 %v4066_v4, %s3950_s20  ;;  %1396 = vrot.lane.b32.xlu1 %v4064_v3, %s3950_s20 }
  0x80   : > { %2570 = vrot.lane.b32.xlu0 %v4126_v15, %s3950_s20  ;;  %2572 = vrot.lane.b32.xlu1 %v4132_v16, %s3950_s20 }
  0x84   : > { %2576 = vrot.lane.b32.xlu0 %v4138_v17, %s3950_s20  ;;  %2578 = vrot.lane.b32.xlu1 %v4140_v18, %s3950_s20 }
  0x86   : > { %v751_v23 = vpop.permute.xlu1 %750  ;;  %v745_v24 = vpop.permute.xlu0 %744 }
  0x87   : > { %v755_v35 = vsel %vm752_vm1, %v745_v24, %v751_v23  ;;  %v758_v36 = vsel %vm752_vm1, %v751_v23, %v745_v24 }
  0x88   : > { %2574 = vrot.lane.b32.xlu0 %v4153_v19, %s3950_s20  ;;  %2580 = vrot.lane.b32.xlu1 %v4156_v20, %s3950_s20  ;;  %v772_v46 = vmul.f32 %v4233_v32, %v755_v35  ;;  %v771_v47 = vmul.f32 %v4238_v34, %v758_v36 }
  0x8a   : > { %v741_v28 = vpop.permute.xlu0 %740  ;;  %v747_v29 = vpop.permute.xlu1 %746  ;;  %v783_v54 = vpack.c.bf16 %v772_v46, %v772_v46  ;;  %v782_v55 = vpack.c.bf16 %v771_v47, %v771_v47 }
  0x8b   : > { %v753_v31 = vsel %vm752_vm1, %v741_v28, %v747_v29  ;;  %v756_v33 = vsel %vm752_vm1, %v747_v29, %v741_v28  ;;  %v993_v28 = vsub.s32 2, %v4208_v22 }
  0x8c   : > { %1535 = vrot.lane.b32.xlu0 %v4073_v10, %s3951_s29  ;;  %1537 = vrot.lane.b32.xlu1 %v4084_v12, %s3951_s29  ;;  %v768_v41 = vmul.f32 %v4233_v32, %v753_v31  ;;  %v767_v43 = vmul.f32 %v4238_v34, %v756_v33  ;;  %v811_v1 = vsel %vm809_vm3, %v782_v55, 0 }
  0x8e   : > { %v743_v37 = vpop.permute.xlu0 %742  ;;  %v749_v38 = vpop.permute.xlu1 %748 }
  0x8f   : > { %v757_v39 = vsel %vm752_vm1, %v749_v38, %v743_v37  ;;  %v754_v40 = vsel %vm752_vm1, %v743_v37, %v749_v38  ;;  %v4311_v37 = vrot.slane %v4223_v30, %v993_v28  ;;  %v4314_v38 = vrot.slane %v4218_v27, %v993_v28 }
  0x90   : > { %1541 = vrot.lane.b32.xlu0 %v4076_v11, %s3951_s29  ;;  %1543 = vrot.lane.b32.xlu1 %v4088_v13, %s3951_s29  ;;  %v770_v42 = vmul.f32 %v4233_v32, %v754_v40  ;;  %v769_v44 = vmul.f32 %v4238_v34, %v757_v39  ;;  %v3841_v39 = vld [vmem:[%s5009_s7 + $0x20] sm:$0xff]  }
  0x92   : > { %v696_v48 = vpop.permute.xlu0 %695  ;;  %v698_v49 = vpop.permute.xlu1 %697  ;;  %v781_v50 = vpack.c.bf16 %v770_v42, %v768_v41  ;;  %v780_v51 = vpack.c.bf16 %v769_v44, %v767_v43  ;;  %v3842_v42 = vld [vmem:[%s5009_s7] sm:$0xff]  }
  0x94   : > { %1539 = vrot.lane.b32.xlu0 %v4066_v4, %s3951_s29  ;;  %1545 = vrot.lane.b32.xlu1 %v4064_v3, %s3951_s29 }
  0x95   : > { %816 = vmatprep.subr.bf16.mxu1 %v781_v50 }
  0x96   : > { %817 = vmatpush1.bf16.msra.mxu1 %v780_v51  ;;  %v702_v56 = vpop.permute.xlu0 %701  ;;  %v704_v57 = vpop.permute.xlu1 %703 }
  0x97   : > { %v710_v58 = vsel %vm709_vm2, %v696_v48, %v702_v56  ;;  %v713_v59 = vsel %vm709_vm2, %v702_v56, %v696_v48  ;;  %3462 = vmatprep.subr.msk.bf16.mxu1 %vm809_vm3, %v783_v54  ;;  %v711_v60 = vsel %vm709_vm2, %v698_v49, %v704_v57  ;;  %v714_v61 = vsel %vm709_vm2, %v704_v57, %v698_v49 }
  0x98   : > { %v724_v62 = vmul.f32 %v4265_v52, %v713_v59  ;;  %v725_v63 = vmul.f32 %v4268_v53, %v710_v58  ;;  %2686 = vrot.lane.b32.xlu0 %v4126_v15, %s3951_s29  ;;  %2688 = vrot.lane.b32.xlu1 %v4132_v16, %s3951_s29  ;;  %v727_v0 = vmul.f32 %v4268_v53, %v711_v60 }
  0x99   : > { %v726_v5 = vmul.f32 %v4265_v52, %v714_v61  ;;  %v3843_v61 = vld [vmem:[%s5009_s7 + $0x28] sm:$0xff]  }
  0x9a   : > { %819 = vmatpush1.bf16.msra.mxu1 %v811_v1  ;;  %v700_v6 = vpop.permute.xlu0 %699  ;;  %v706_v7 = vpop.permute.xlu1 %705  ;;  %v737_v8 = vpack.c.bf16 %v727_v0, %v725_v63 }
  0x9b   : > { %v712_v9 = vsel %vm709_vm2, %v700_v6, %v706_v7  ;;  %v715_v21 = vsel %vm709_vm2, %v706_v7, %v700_v6  ;;  %v736_v23 = vpack.c.bf16 %v726_v5, %v724_v62 }
  0x9c   : > { %v728_v24 = vmul.f32 %v4265_v52, %v715_v21  ;;  %v729_v26 = vmul.f32 %v4268_v53, %v712_v9  ;;  %2692 = vrot.lane.b32.xlu0 %v4138_v17, %s3951_s29  ;;  %2694 = vrot.lane.b32.xlu1 %v4140_v18, %s3951_s29 }
  0x9d   : > { %3463 = vmatmul.mubr.msk.bf16.vlgmr.msra.gmra.mrb[0].mxu1 %vm799_vm4, %v3840_v2  ;;  %909 = vmatprep.subr.bf16.mxu0 %v737_v8  ;;  %v3844_v2 = vld [vmem:[%s5009_s7 + $0x8] sm:$0xff]  }
  0x9e   : > { %v738_v29 = vpack.c.bf16 %v728_v24, %v728_v24  ;;  %v739_v31 = vpack.c.bf16 %v729_v26, %v729_v26  ;;  %3656 = vmatprep.subr.bf16.mxu1 %v737_v8  ;;  %910 = vmatpush1.bf16.msra.mxu0 %v736_v23  ;;  %v973_v33 = vpop.permute.xlu0 %972  ;;  %v975_v35 = vpop.permute.xlu1 %974 }
  0x9f   : > { %3658 = vmatpush1.bf16.msra.mxu1 %v736_v23  ;;  %858 = vmatprep.mubr.bf16.mxu1 %v3946_v14 }
  0xa0   : > { %2690 = vrot.lane.b32.xlu0 %v4153_v19, %s3951_s29  ;;  %2696 = vrot.lane.b32.xlu1 %v4156_v20, %s3951_s29  ;;  %v904_v36 = vsel %vm809_vm3, %v738_v29, 0  ;;  %s658_s29 = scalar_lea.vmem %s5018_s16, %s4047_s23 }
  0xa1   : > { %3469 = vmatprep.subr.msk.bf16.mxu0 %vm809_vm3, %v739_v31  ;;  %3657 = vmatprep.subr.msk.bf16.mxu1 %vm809_vm3, %v739_v31 }
  0xa2   : > { %912 = vmatpush1.bf16.msra.mxu0 %v904_v36  ;;  %v979_v40 = vpop.permute.xlu0 %978  ;;  %v981_v41 = vpop.permute.xlu1 %980 }
  0xa3   : > { %3659 = vmatpush1.bf16.msra.mxu1 %v904_v36  ;;  %v985_v43 = vsel %vm984_vm5, %v973_v33, %v979_v40  ;;  %v988_v44 = vsel %vm984_vm5, %v979_v40, %v973_v33  ;;  %v986_v45 = vsel %vm984_vm5, %v975_v35, %v981_v41  ;;  %v989_v46 = vsel %vm984_vm5, %v981_v41, %v975_v35  ;;  %v3846_v36 = vld [vmem:[%s5009_s7 + $0x30] sm:$0xff]  }
  0xa4   : > { %v999_v47 = vmul.f32 %v4311_v37, %v988_v44  ;;  %v1000_v48 = vmul.f32 %v4314_v38, %v985_v43  ;;  %v1001_v49 = vmul.f32 %v4311_v37, %v989_v46  ;;  %v1002_v50 = vmul.f32 %v4314_v38, %v986_v45  ;;  %1684 = vrot.lane.b32.xlu0 %v4073_v10, %s3952_s22  ;;  %v3845_v44 = vld [vmem:[%s5009_s7 + $0x10] sm:$0xff]  }
  0xa5   : > { %1686 = vrot.lane.b32.xlu1 %v4084_v12, %s3952_s22  ;;  %3464 = vmatmul.mubr.msk.bf16.gmra.mrb[4].mxu1 %vm799_vm4, %v3841_v39 }
  0xa6   : > { %v1012_v51 = vpack.c.bf16 %v1001_v49, %v999_v47  ;;  %v977_v54 = vpop.permute.xlu0 %976  ;;  %v983_v55 = vpop.permute.xlu1 %982  ;;  %v1013_v56 = vpack.c.bf16 %v1002_v50, %v1000_v48  ;;  %3470 = vmatmul.mubr.msk.bf16.vlgmr.msra.gmra.mrb[0].mxu0 %vm799_vm4, %v3842_v42  ;;  %868 = vmatprep.mubr.bf16.mxu1 %v3946_v14  ;;  %v1142_v42 = vsub.s32 3, %v4208_v22 }
  0xa7   : > { %v987_v57 = vsel %vm984_vm5, %v977_v54, %v983_v55  ;;  %v990_v58 = vsel %vm984_vm5, %v983_v55, %v977_v54  ;;  %951 = vmatprep.mubr.bf16.mxu0 %v3946_v14 }
  0xa8   : > { %v1003_v59 = vmul.f32 %v4311_v37, %v990_v58  ;;  %v1004_v60 = vmul.f32 %v4314_v38, %v987_v57  ;;  %1690 = vrot.lane.b32.xlu0 %v4076_v11, %s3952_s22  ;;  %1046 = vmatprep.subr.bf16.mxu0 %v1013_v56  ;;  %v4411_v48 = vrot.slane %v4218_v27, %v1142_v42  ;;  %v3847_v58 = vld [vmem:[%s5009_s7 + $0x38] sm:$0xff]  }
  0xa9   : > { %1692 = vrot.lane.b32.xlu1 %v4088_v13, %s3952_s22  ;;  %1047 = vmatpush1.bf16.msra.mxu0 %v1012_v51 }
  0xaa   : > { %v1014_v62 = vpack.c.bf16 %v1003_v59, %v1003_v59  ;;  %v1015_v63 = vpack.c.bf16 %v1004_v60, %v1004_v60  ;;  %v2063_v0 = vpop.permute.xlu0 %2062  ;;  %v2065_v1 = vpop.permute.xlu1 %2064 }
  0xac   : > { %2802 = vrot.lane.b32.xlu0 %v4126_v15, %s3952_s22  ;;  %3482 = vmatprep.subr.msk.bf16.mxu0 %vm809_vm3, %v1015_v63  ;;  %v1041_v5 = vsel %vm809_vm3, %v1014_v62, 0 }
  0xad   : > { %2804 = vrot.lane.b32.xlu1 %v4132_v16, %s3952_s22  ;;  %3465 = vmatmul.mubr.msk.bf16.gmra.mrb[8].mxu1 %vm799_vm4, %v3843_v61 }
  0xae   : > { %1049 = vmatpush1.bf16.msra.mxu0 %v1041_v5  ;;  %v2069_v6 = vpop.permute.xlu0 %2068  ;;  %v2071_v7 = vpop.permute.xlu1 %2070  ;;  %961 = vmatprep.mubr.bf16.mxu1 %v3946_v14 }
  0xaf   : > { %v2074_v8 = vsel %vm752_vm1, %v2063_v0, %v2069_v6  ;;  %v2075_v9 = vsel %vm752_vm1, %v2065_v1, %v2071_v7  ;;  %3471 = vmatmul.mubr.msk.bf16.gmra.mrb[4].mxu0 %vm799_vm4, %v3844_v2  ;;  %v2077_v24 = vsel %vm752_vm1, %v2069_v6, %v2063_v0  ;;  %v2078_v26 = vsel %vm752_vm1, %v2071_v7, %v2065_v1  ;;  %v3848_v6 = vld [vmem:[%s5011_s9 + $0x10] sm:$0xff]  }
  0xb0   : > { %v2081_v21 = vmul.f32 %v2074_v8, %v4233_v32  ;;  %v2083_v23 = vmul.f32 %v2075_v9, %v4233_v32  ;;  %2808 = vrot.lane.b32.xlu0 %v4138_v17, %s3952_s22  ;;  %1078 = vmatprep.mubr.bf16.mxu0 %v3946_v14  ;;  %v2080_v39 = vmul.f32 %v2077_v24, %v4238_v34 }
  0xb1   : > { %2810 = vrot.lane.b32.xlu1 %v4140_v18, %s3952_s22  ;;  %v2082_v40 = vmul.f32 %v2078_v26, %v4238_v34  ;;  %v3849_v26 = vld [vmem:[%s5009_s7 + $0x40] sm:$0xff]  }
  0xb2   : > { %v2067_v28 = vpop.permute.xlu0 %2066  ;;  %v2073_v29 = vpop.permute.xlu1 %2072  ;;  %v2092_v31 = vpack.c.bf16 %v2083_v23, %v2081_v21 }
  0xb3   : > { %v2076_v33 = vsel %vm752_vm1, %v2067_v28, %v2073_v29  ;;  %v2079_v35 = vsel %vm752_vm1, %v2073_v29, %v2067_v28 }
  0xb4   : > { %v2085_v41 = vmul.f32 %v2076_v33, %v4233_v32  ;;  %1688 = vrot.lane.b32.xlu0 %v4066_v4, %s3952_s22  ;;  %2118 = vmatprep.subr.bf16.mxu1 %v2092_v31  ;;  %v2084_v43 = vmul.f32 %v2079_v35, %v4238_v34  ;;  %v2091_v32 = vpack.c.bf16 %v2082_v40, %v2080_v39 }
  0xb5   : > { %1694 = vrot.lane.b32.xlu1 %v4064_v3, %s3952_s22  ;;  %v4408_v34 = vrot.slane %v4223_v30, %v1142_v42 }
  0xb6   : > { %v1122_v45 = vpop.permute.xlu0 %1121  ;;  %v1124_v46 = vpop.permute.xlu1 %1123  ;;  %v2094_v47 = vpack.c.bf16 %v2085_v41, %v2085_v41  ;;  %v2093_v49 = vpack.c.bf16 %v2084_v43, %v2084_v43  ;;  %v3850_v41 = vld [vmem:[%s5011_s9 + $0x18] sm:$0xff]  }
  0xb7   : > { %3483 = vmatmul.mubr.msk.bf16.vlgmr.msra.gmra.mrb[0].mxu0 %vm799_vm4, %v3846_v36 }
  0xb8   : > { %2806 = vrot.lane.b32.xlu0 %v4153_v19, %s3952_s22  ;;  %1088 = vmatprep.mubr.bf16.mxu0 %v3946_v14  ;;  %v2113_v63 = vsel %vm682_vm0, %v2093_v49, 0 }
  0xb9   : > { %2812 = vrot.lane.b32.xlu1 %v4156_v20, %s3952_s22  ;;  %3472 = vmatmul.mubr.msk.bf16.vlgmr.msra.gmra.mrb[8].mxu1 %vm799_vm4, %v3845_v44  ;;  %s3953_s22 = smov 111  }
  0xba   : > { %2119 = vmatpush1.bf16.msra.mxu1 %v2091_v32  ;;  %v1128_v50 = vpop.permute.xlu0 %1127  ;;  %v1130_v51 = vpop.permute.xlu1 %1129  ;;  %2150 = vmatprep.mubr.bf16.mxu1 %v3946_v14 }
  0xbb   : > { %3572 = vmatprep.subr.msk.bf16.mxu1 %vm682_vm0, %v2094_v47  ;;  %v1134_v54 = vsel %vm1133_vm6, %v1122_v45, %v1128_v50  ;;  %v1137_v55 = vsel %vm1133_vm6, %v1128_v50, %v1122_v45  ;;  %v1135_v56 = vsel %vm1133_vm6, %v1124_v46, %v1130_v51  ;;  %v1138_v57 = vsel %vm1133_vm6, %v1130_v51, %v1124_v46 }
  0xbc   : > { %v1148_v59 = vmul.f32 %v4408_v34, %v1137_v55  ;;  %v1149_v60 = vmul.f32 %v4411_v48, %v1134_v54  ;;  %v1150_v61 = vmul.f32 %v4408_v34, %v1138_v57  ;;  %v1151_v62 = vmul.f32 %v4411_v48, %v1135_v56  ;;  %2918 = vrot.lane.b32.xlu0 %v4126_v15, %s3953_s22 }
  0xbd   : > { %2920 = vrot.lane.b32.xlu1 %v4132_v16, %s3953_s22  ;;  %v1278_v50 = vpack.c.bf16 %v4088_v13, %v4076_v11 }
  0xbe   : > { %v1161_v0 = vpack.c.bf16 %v1150_v61, %v1148_v59  ;;  %2121 = vmatpush1.bf16.msra.mxu1 %v2113_v63  ;;  %v2031_v1 = vpop.permute.xlu0 %2030  ;;  %v2033_v2 = vpop.permute.xlu1 %2032  ;;  %v1162_v5 = vpack.c.bf16 %v1151_v62, %v1149_v60 }
  0xbf   : > { %3484 = vmatmul.mubr.msk.bf16.gmra.mrb[4].mxu0 %vm799_vm4, %v3847_v58 }
  0xc0   : > { %2924 = vrot.lane.b32.xlu0 %v4138_v17, %s3953_s22  ;;  %1195 = vmatprep.subr.bf16.mxu0 %v1162_v5 }
  0xc1   : > { %2926 = vrot.lane.b32.xlu1 %v4140_v18, %s3953_s22  ;;  %1196 = vmatpush1.bf16.msra.mxu0 %v1161_v0  ;;  %v1280_v0 = vpack.c.bf16 %v4064_v3, %v4064_v3 }
  0xc2   : > { %v2037_v7 = vpop.permute.xlu0 %2036  ;;  %v2039_v8 = vpop.permute.xlu1 %2038  ;;  %3573 = vmatmul.mubr.msk.bf16.vlgmr.msra.gmra.mrb[12].mxu1 %vm2105_vm7, %v3848_v6  ;;  %1098 = vmatprep.mubr.bf16.mxu0 %v3946_v14 }
  0xc3   : > { %v2042_v9 = vsel %vm709_vm2, %v2031_v1, %v2037_v7  ;;  %v2045_v21 = vsel %vm709_vm2, %v2037_v7, %v2031_v1  ;;  %v2043_v23 = vsel %vm709_vm2, %v2033_v2, %v2039_v8  ;;  %v2046_v24 = vsel %vm709_vm2, %v2039_v8, %v2033_v2  ;;  %2160 = vmatprep.mubr.bf16.mxu1 %v3946_v14 }
  0xc4   : > { %v2048_v28 = vmul.f32 %v2045_v21, %v4265_v52  ;;  %v2049_v29 = vmul.f32 %v2042_v9, %v4268_v53  ;;  %v2050_v31 = vmul.f32 %v2046_v24, %v4265_v52  ;;  %v2051_v33 = vmul.f32 %v2043_v23, %v4268_v53  ;;  %2922 = vrot.lane.b32.xlu0 %v4153_v19, %s3953_s22  ;;  %v3853_v24 = vld [vmem:[%s5009_s7 + $0x50] sm:$0xff]  }
  0xc5   : > { %2928 = vrot.lane.b32.xlu1 %v4156_v20, %s3953_s22  ;;  %v1279_v1 = vpack.c.bf16 %v4066_v4, %v4066_v4 }
  0xc6   : > { %v2058_v35 = vpack.c.bf16 %v2050_v31, %v2048_v28  ;;  %v1126_v36 = vpop.permute.xlu0 %1125  ;;  %v1132_v39 = vpop.permute.xlu1 %1131  ;;  %v2059_v40 = vpack.c.bf16 %v2051_v33, %v2049_v29 }
  0xc7   : > { %v1136_v42 = vsel %vm1133_vm6, %v1126_v36, %v1132_v39  ;;  %v1139_v43 = vsel %vm1133_vm6, %v1132_v39, %v1126_v36  ;;  %3485 = vmatmul.mubr.msk.bf16.gmra.mrb[8].mxu0 %vm799_vm4, %v3849_v26  ;;  %v1306_v26 = vsel %vm809_vm3, %v1279_v1, 0 }
  0xc8   : > { %v1152_v44 = vmul.f32 %v4408_v34, %v1139_v43  ;;  %v1153_v45 = vmul.f32 %v4411_v48, %v1136_v42  ;;  %1833 = vrot.lane.b32.xlu0 %v4073_v10, %s3953_s22  ;;  %2193 = vmatprep.subr.bf16.mxu1 %v2059_v40  ;;  %v3855_v43 = vld [vmem:[%s5009_s7 + $0x58] sm:$0xff]  }
  0xc9   : > { %1835 = vrot.lane.b32.xlu1 %v4084_v12, %s3953_s22  ;;  %2194 = vmatpush1.bf16.msra.mxu1 %v2058_v35  ;;  %v3854_v35 = vld [vmem:[%s5011_s9 + $0x8] sm:$0xff]  }
  0xca   : > { %v1163_v46 = vpack.c.bf16 %v1152_v44, %v1152_v44  ;;  %v1164_v47 = vpack.c.bf16 %v1153_v45, %v1153_v45  ;;  %v2035_v32 = vpop.permute.xlu0 %2034  ;;  %v2041_v49 = vpop.permute.xlu1 %2040  ;;  %3574 = vmatmul.mubr.msk.bf16.gmra.mrb[16].mxu1 %vm2105_vm7, %v3850_v41  ;;  %1227 = vmatprep.mubr.bf16.mxu0 %v3946_v14 }
  0xcb   : > { %v2044_v51 = vsel %vm709_vm2, %v2035_v32, %v2041_v49  ;;  %v2047_v54 = vsel %vm709_vm2, %v2041_v49, %v2035_v32  ;;  %2225 = vmatprep.mubr.bf16.mxu1 %v3946_v14 }
  0xcc   : > { %v2052_v55 = vmul.f32 %v2047_v54, %v4265_v52  ;;  %v2053_v56 = vmul.f32 %v2044_v51, %v4268_v53  ;;  %1839 = vrot.lane.b32.xlu0 %v4076_v11, %s3953_s22  ;;  %3495 = vmatprep.subr.msk.bf16.mxu0 %vm809_vm3, %v1164_v47  ;;  %v1190_v57 = vsel %vm809_vm3, %v1163_v46, 0  ;;  %v3851_v52 = vld [vmem:[%s5009_s7 + $0x48] sm:$0xff]   ;;  %v1277_v53 = vpack.c.bf16 %v4084_v12, %v4073_v10  ;;  %v3856_v54 = vld [vmem:[%s5011_s9 + $0x20] sm:$0xff]  }
  0xcd   : > { %1841 = vrot.lane.b32.xlu1 %v4088_v13, %s3953_s22  ;;  %1198 = vmatpush1.bf16.msra.mxu0 %v1190_v57  ;;  %v3852_v13 = vld [vmem:[%s5011_s9] sm:$0xff]  }
  0xce   : > { %v2060_v58 = vpack.c.bf16 %v2052_v55, %v2052_v55  ;;  %v2061_v59 = vpack.c.bf16 %v2053_v56, %v2053_v56  ;;  %v2247_v60 = vpop.permute.xlu0 %2246  ;;  %v2249_v61 = vpop.permute.xlu1 %2248  ;;  %1311 = vmatprep.subr.bf16.mxu0 %v1278_v50 }
  0xd0   : > { %1837 = vrot.lane.b32.xlu0 %v4066_v4, %s3953_s22  ;;  %3577 = vmatprep.subr.msk.bf16.mxu1 %vm682_vm0, %v2061_v59  ;;  %v2188_v11 = vsel %vm682_vm0, %v2060_v58, 0 }
  0xd1   : > { %1843 = vrot.lane.b32.xlu1 %v4064_v3, %s3953_s22  ;;  %2196 = vmatpush1.bf16.msra.mxu1 %v2188_v11  ;;  %v1407_v11 = vsub.s32 5, %v4208_v22 }
  0xd2   : > { %v2253_v62 = vpop.permute.xlu0 %2252  ;;  %v2255_v63 = vpop.permute.xlu1 %2254  ;;  %3496 = vmatmul.mubr.msk.bf16.vlgmr.msra.gmra.mrb[0].mxu0 %vm799_vm4, %v3851_v52 }
  0xd3   : > { %v2258_v2 = vsel %vm984_vm5, %v2247_v60, %v2253_v62  ;;  %v2261_v5 = vsel %vm984_vm5, %v2253_v62, %v2247_v60  ;;  %v2259_v6 = vsel %vm984_vm5, %v2249_v61, %v2255_v63  ;;  %v2262_v10 = vsel %vm984_vm5, %v2255_v63, %v2249_v61  ;;  %1237 = vmatprep.mubr.bf16.mxu0 %v3946_v14 }
  0xd4   : > { %v2264_v12 = vmul.f32 %v2261_v5, %v4311_v37  ;;  %v2265_v3 = vmul.f32 %v2258_v2, %v4314_v38  ;;  %v2266_v4 = vmul.f32 %v2262_v10, %v4311_v37  ;;  %v2267_v7 = vmul.f32 %v2259_v6, %v4314_v38  ;;  %3578 = vmatmul.mubr.msk.bf16.vlgmr.msra.gmra.mrb[12].mxu1 %vm2105_vm7, %v3852_v13  ;;  %v3858_v5 = vld [vmem:[%s5011_s9 + $0x28] sm:$0xff]  }
  0xd5   : > { %2235 = vmatprep.mubr.bf16.mxu1 %v3946_v14  ;;  %1312 = vmatpush1.bf16.msra.mxu0 %v1277_v53  ;;  %v4592_v1 = vrot.slane %v4223_v30, %v1407_v11  ;;  %v4595_v2 = vrot.slane %v4218_v27, %v1407_v11 }
  0xd6   : > { %v2275_v8 = vpack.c.bf16 %v2266_v4, %v2264_v12  ;;  %v2251_v9 = vpop.permute.xlu0 %2250  ;;  %v2257_v21 = vpop.permute.xlu1 %2256  ;;  %v2276_v23 = vpack.c.bf16 %v2267_v7, %v2265_v3  ;;  %3508 = vmatprep.subr.msk.bf16.mxu0 %vm809_vm3, %v1280_v0  ;;  %v3857_v0 = vld [vmem:[%s5009_s7 + $0x60] sm:$0xff]  }
  0xd7   : > { %v2260_v28 = vsel %vm984_vm5, %v2251_v9, %v2257_v21  ;;  %v2263_v29 = vsel %vm984_vm5, %v2257_v21, %v2251_v9 }
  0xd8   : > { %v2268_v31 = vmul.f32 %v2263_v29, %v4311_v37  ;;  %v2269_v33 = vmul.f32 %v2260_v28, %v4314_v38  ;;  %2301 = vmatprep.subr.bf16.mxu1 %v2276_v23  ;;  %v3859_v28 = vld [vmem:[%s5009_s7 + $0x68] sm:$0xff]  }
  0xd9   : > { %2302 = vmatpush1.bf16.msra.mxu1 %v2275_v8  ;;  %1314 = vmatpush1.bf16.msra.mxu0 %v1306_v26 }
  0xda   : > { %v2277_v36 = vpack.c.bf16 %v2268_v31, %v2268_v31  ;;  %v2278_v39 = vpack.c.bf16 %v2269_v33, %v2269_v33  ;;  %v2363_v40 = vpop.permute.xlu0 %2362  ;;  %v2365_v41 = vpop.permute.xlu1 %2364  ;;  %3497 = vmatmul.mubr.msk.bf16.gmra.mrb[4].mxu0 %vm799_vm4, %v3853_v24 }
  0xdb   : > { %1247 = vmatprep.mubr.bf16.mxu0 %v3946_v14 }
  0xdc   : > { %3579 = vmatmul.mubr.msk.bf16.gmra.mrb[16].mxu1 %vm2105_vm7, %v3854_v35  ;;  %3586 = vmatprep.subr.msk.bf16.mxu1 %vm682_vm0, %v2278_v39  ;;  %v2296_v37 = vsel %vm682_vm0, %v2277_v36, 0  ;;  %v3860_v36 = vld [vmem:[%s5011_s9 + $0x30] sm:$0xff]   ;;  %v2483_v39 = vpack.c.bf16 %v4132_v16, %v4126_v15 }
  0xdd   : > { %2304 = vmatpush1.bf16.msra.mxu1 %v2296_v37  ;;  %2333 = vmatprep.mubr.bf16.mxu1 %v3946_v14 }
  0xde   : > { %v2369_v38 = vpop.permute.xlu0 %2368  ;;  %v2371_v42 = vpop.permute.xlu1 %2370 }
  0xdf   : > { %v2374_v44 = vsel %vm1133_vm6, %v2363_v40, %v2369_v38  ;;  %v2377_v45 = vsel %vm1133_vm6, %v2369_v38, %v2363_v40  ;;  %v2375_v46 = vsel %vm1133_vm6, %v2365_v41, %v2371_v42  ;;  %v2378_v47 = vsel %vm1133_vm6, %v2371_v42, %v2365_v41 }
  0xe0   : > { %v2380_v32 = vmul.f32 %v2377_v45, %v4408_v34  ;;  %v2381_v49 = vmul.f32 %v2374_v44, %v4411_v48  ;;  %v2382_v50 = vmul.f32 %v2378_v47, %v4408_v34  ;;  %v2383_v51 = vmul.f32 %v2375_v46, %v4411_v48 }
  0xe1   : > { %v2486_v42 = vpack.c.bf16 %v4156_v20, %v4156_v20 }
  0xe2   : > { %v2391_v55 = vpack.c.bf16 %v2382_v50, %v2380_v32  ;;  %v2367_v56 = vpop.permute.xlu0 %2366  ;;  %v2373_v57 = vpop.permute.xlu1 %2372  ;;  %3498 = vmatmul.mubr.msk.bf16.gmra.mrb[8].mxu0 %vm799_vm4, %v3855_v43  ;;  %v2392_v58 = vpack.c.bf16 %v2383_v51, %v2381_v49  ;;  %v2485_v43 = vpack.c.bf16 %v4153_v19, %v4153_v19  ;;  %v3861_v19 = vld [vmem:[%s5009_s7 + $0x70] sm:$0xff]   ;;  %v3862_v49 = vld [vmem:[%s5011_s9 + $0x38] sm:$0xff]  }
  0xe3   : > { %v2376_v59 = vsel %vm1133_vm6, %v2367_v56, %v2373_v57  ;;  %v2379_v60 = vsel %vm1133_vm6, %v2373_v57, %v2367_v56  ;;  %1343 = vmatprep.mubr.bf16.mxu0 %v3946_v14 }
  0xe4   : > { %v2384_v61 = vmul.f32 %v2379_v60, %v4408_v34  ;;  %v2385_v52 = vmul.f32 %v2376_v59, %v4411_v48  ;;  %3587 = vmatmul.mubr.msk.bf16.vlgmr.msra.gmra.mrb[12].mxu1 %vm2105_vm7, %v3856_v54  ;;  %2417 = vmatprep.subr.bf16.mxu1 %v2392_v58  ;;  %v2484_v34 = vpack.c.bf16 %v4140_v18, %v4138_v17  ;;  %v2504_v20 = vsel %vm682_vm0, %v2485_v43, 0 }
  0xe5   : > { %2418 = vmatpush1.bf16.msra.mxu1 %v2391_v55  ;;  %2343 = vmatprep.mubr.bf16.mxu1 %v3946_v14  ;;  %v1556_v59 = vsub.s32 6, %v4208_v22 }
  0xe6   : > { %v2393_v13 = vpack.c.bf16 %v2384_v61, %v2384_v61  ;;  %v2394_v53 = vpack.c.bf16 %v2385_v52, %v2385_v52  ;;  %v1387_v62 = vpop.permute.xlu0 %1386  ;;  %v1389_v63 = vpop.permute.xlu1 %1388 }
  0xe8   : > { %3595 = vmatprep.subr.msk.bf16.mxu1 %vm682_vm0, %v2394_v53  ;;  %v2412_v48 = vsel %vm682_vm0, %v2393_v13, 0 }
  0xe9   : > { %2420 = vmatpush1.bf16.msra.mxu1 %v2412_v48 }
  0xea   : > { %v1393_v6 = vpop.permute.xlu0 %1392  ;;  %v1395_v10 = vpop.permute.xlu1 %1394  ;;  %3509 = vmatmul.mubr.msk.bf16.vlgmr.msra.gmra.mrb[0].mxu0 %vm799_vm4, %v3857_v0  ;;  %2509 = vmatprep.subr.bf16.mxu1 %v2484_v34  ;;  %v4679_v0 = vrot.slane %v4218_v27, %v1556_v59  ;;  %v3864_v34 = vld [vmem:[%s5011_s9 + $0x40] sm:$0xff]  }
  0xeb   : > { %v1399_v17 = vsel %vm1398_vm8, %v1387_v62, %v1393_v6  ;;  %v1402_v18 = vsel %vm1398_vm8, %v1393_v6, %v1387_v62  ;;  %v1400_v12 = vsel %vm1398_vm8, %v1389_v63, %v1395_v10  ;;  %v1403_v3 = vsel %vm1398_vm8, %v1395_v10, %v1389_v63  ;;  %1353 = vmatprep.mubr.bf16.mxu0 %v3946_v14  ;;  %v3863_v62 = vld [vmem:[%s5009_s7 + $0x78] sm:$0xff]  }
  0xec   : > { %v1413_v4 = vmul.f32 %v4592_v1, %v1399_v17  ;;  %v1414_v7 = vmul.f32 %v4595_v2, %v1402_v18  ;;  %v1415_v8 = vmul.f32 %v4592_v1, %v1400_v12  ;;  %v1416_v9 = vmul.f32 %v4595_v2, %v1403_v3  ;;  %3588 = vmatmul.mubr.msk.bf16.gmra.mrb[16].mxu1 %vm2105_vm7, %v3858_v5 }
  0xed   : > { %2449 = vmatprep.mubr.bf16.mxu1 %v3946_v14  ;;  %v4676_v63 = vrot.slane %v4223_v30, %v1556_v59 }
  0xee   : > { %v1426_v21 = vpack.c.bf16 %v1415_v8, %v1413_v4  ;;  %v1391_v23 = vpop.permute.xlu0 %1390  ;;  %v1397_v24 = vpop.permute.xlu1 %1396  ;;  %v1427_v26 = vpack.c.bf16 %v1416_v9, %v1414_v7 }
  0xef   : > { %v1401_v29 = vsel %vm1398_vm8, %v1391_v23, %v1397_v24  ;;  %v1404_v31 = vsel %vm1398_vm8, %v1397_v24, %v1391_v23 }
  0xf0   : > { %v1417_v33 = vmul.f32 %v4592_v1, %v1401_v29  ;;  %v1418_v35 = vmul.f32 %v4595_v2, %v1404_v31  ;;  %1460 = vmatprep.subr.bf16.mxu0 %v1427_v26  ;;  %v3865_v26 = vld [vmem:[%s5009_s7 + $0x80] sm:$0xff]  }
  0xf1   : > { %1461 = vmatpush1.bf16.msra.mxu0 %v1426_v21 }
  0xf2   : > { %v1428_v40 = vpack.c.bf16 %v1417_v33, %v1417_v33  ;;  %v1429_v41 = vpack.c.bf16 %v1418_v35, %v1418_v35  ;;  %v2571_v37 = vpop.permute.xlu0 %2570  ;;  %v2573_v38 = vpop.permute.xlu1 %2572  ;;  %3510 = vmatmul.mubr.msk.bf16.gmra.mrb[4].mxu0 %vm799_vm4, %v3859_v28 }
  0xf3   : > { %1363 = vmatprep.mubr.bf16.mxu0 %v3946_v14 }
  0xf4   : > { %3521 = vmatprep.subr.msk.bf16.mxu0 %vm809_vm3, %v1429_v41  ;;  %3596 = vmatmul.mubr.msk.bf16.vlgmr.msra.gmra.mrb[12].mxu1 %vm2105_vm7, %v3860_v36  ;;  %v1455_v15 = vsel %vm809_vm3, %v1428_v40, 0  ;;  %v3866_v36 = vld [vmem:[%s5011_s9 + $0x48] sm:$0xff]  }
  0xf5   : > { %1463 = vmatpush1.bf16.msra.mxu0 %v1455_v15  ;;  %2510 = vmatpush1.bf16.msra.mxu1 %v2483_v39  ;;  %v3867_v15 = vld [vmem:[%s5009_s7 + $0x88] sm:$0xff]  }
  0xf6   : > { %v2577_v16 = vpop.permute.xlu0 %2576  ;;  %v2579_v44 = vpop.permute.xlu1 %2578  ;;  %3604 = vmatprep.subr.msk.bf16.mxu1 %vm682_vm0, %v2486_v42  ;;  %2459 = vmatprep.mubr.bf16.mxu1 %v3946_v14 }
  0xf7   : > { %v2585_v45 = vsel %vm1398_vm8, %v2577_v16, %v2571_v37  ;;  %v2586_v46 = vsel %vm1398_vm8, %v2579_v44, %v2573_v38  ;;  %v2582_v55 = vsel %vm1398_vm8, %v2571_v37, %v2577_v16  ;;  %v2583_v56 = vsel %vm1398_vm8, %v2573_v38, %v2579_v44 }
  0xf8   : > { %v2589_v47 = vmul.f32 %v2585_v45, %v4595_v2  ;;  %v2591_v32 = vmul.f32 %v2586_v46, %v4595_v2  ;;  %v2588_v60 = vmul.f32 %v2582_v55, %v4592_v1  ;;  %v2590_v61 = vmul.f32 %v2583_v56, %v4592_v1  ;;  %v3036_v45 = vld [vmem:[%s5012_s10 + $0x10] sm:$0xff]  ;;  %v3034_v46 = vld [vmem:[%s5012_s10] sm:$0xff] }
  0xf9   : > { %2512 = vmatpush1.bf16.msra.mxu1 %v2504_v20  ;;  %3050 = vperm.xlu1 %3838, %v3036_v45  }
  0xfa   : > { %v2575_v50 = vpop.permute.xlu0 %2574  ;;  %v2581_v51 = vpop.permute.xlu1 %2580  ;;  %3511 = vmatmul.mubr.msk.bf16.gmra.mrb[8].mxu0 %vm799_vm4, %v3861_v19  ;;  %v2600_v54 = vpack.c.bf16 %v2591_v32, %v2589_v47  ;;  %v2599_v48 = vpack.c.bf16 %v2590_v61, %v2588_v60  ;;  %3040 = vperm.xlu0 %3837, %v3034_v46   ;;  %v3035_v60 = vld [vmem:[%s5012_s10 + $0x8] sm:$0xff]  ;;  %v1982_v61 = vld [vmem:[%s5010_s8] sm:$0xff] }
  0xfb   : > { %v2584_v57 = vsel %vm1398_vm8, %v2575_v50, %v2581_v51  ;;  %v2587_v58 = vsel %vm1398_vm8, %v2581_v51, %v2575_v50  ;;  %1492 = vmatprep.mubr.bf16.mxu0 %v3946_v14  ;;  %v3868_v51 = vld [vmem:[%s5011_s9 + $0x50] sm:$0xff]  }
  0xfc   : > { %3597 = vmatmul.mubr.msk.bf16.gmra.mrb[16].mxu1 %vm2105_vm7, %v3862_v49  ;;  %2625 = vmatprep.subr.bf16.mxu1 %v2600_v54  ;;  %v2592_v52 = vmul.f32 %v2584_v57, %v4592_v1  ;;  %v2593_v11 = vmul.f32 %v2587_v58, %v4595_v2 }
  0xfd   : > { %2541 = vmatprep.mubr.bf16.mxu1 %v3946_v14  ;;  %3045 = vperm.xlu1 %3838, %v3035_v60  }
  0xfe   : > { %v1536_v13 = vpop.permute.xlu0 %1535  ;;  %v1538_v53 = vpop.permute.xlu1 %1537  ;;  %v2601_v1 = vpack.c.bf16 %v2592_v52, %v2592_v52  ;;  %v2602_v2 = vpack.c.bf16 %v2593_v11, %v2593_v11  ;;  %1990 = vperm.xlu0 %3837, %v1982_v61  }
 0x100   : > { %v2620_v35 = vsel %vm682_vm0, %v2601_v1, 0 }
 0x102   : > { %v1542_v5 = vpop.permute.xlu0 %1541  ;;  %v1544_v6 = vpop.permute.xlu1 %1543  ;;  %3522 = vmatmul.mubr.msk.bf16.vlgmr.msra.gmra.mrb[0].mxu0 %vm799_vm4, %v3863_v62 }
 0x103   : > { %v1548_v10 = vsel %vm1547_vm9, %v1536_v13, %v1542_v5  ;;  %v1551_v17 = vsel %vm1547_vm9, %v1542_v5, %v1536_v13  ;;  %v1549_v18 = vsel %vm1547_vm9, %v1538_v53, %v1544_v6  ;;  %v1552_v12 = vsel %vm1547_vm9, %v1544_v6, %v1538_v53  ;;  %1502 = vmatprep.mubr.bf16.mxu0 %v3946_v14  ;;  %v3870_v5 = vld [vmem:[%s5011_s9 + $0x58] sm:$0xff]   ;;  %v1986_v6 = vld [vmem:[%s5010_s8 + $0x20] sm:$0xff] }
 0x104   : > { %v1562_v3 = vmul.f32 %v4676_v63, %v1548_v10  ;;  %v1563_v4 = vmul.f32 %v4679_v0, %v1551_v17  ;;  %v1564_v7 = vmul.f32 %v4676_v63, %v1549_v18  ;;  %v1565_v8 = vmul.f32 %v4679_v0, %v1552_v12  ;;  %3605 = vmatmul.mubr.msk.bf16.vlgmr.msra.gmra.mrb[12].mxu1 %vm2105_vm7, %v3864_v34  ;;  %v3037_v18 = vld [vmem:[%s5012_s10 + $0x18] sm:$0xff] }
 0x105   : > { %2626 = vmatpush1.bf16.msra.mxu1 %v2599_v48  ;;  %2551 = vmatprep.mubr.bf16.mxu1 %v3946_v14  ;;  %v1705_v13 = vsub.s32 7, %v4208_v22  ;;  %v3869_v48 = vld [vmem:[%s5009_s7 + $0x90] sm:$0xff]  }
 0x106   : > { %v1575_v9 = vpack.c.bf16 %v1564_v7, %v1562_v3  ;;  %3613 = vmatprep.subr.msk.bf16.mxu1 %vm682_vm0, %v2602_v2  ;;  %v1540_v21 = vpop.permute.xlu0 %1539  ;;  %v1546_v23 = vpop.permute.xlu1 %1545  ;;  %v1576_v24 = vpack.c.bf16 %v1565_v8, %v1563_v4  ;;  %2010 = vperm.xlu0 %3837, %v1986_v6   ;;  %v1984_v8 = vld [vmem:[%s5010_s8 + $0x10] sm:$0xff] }
 0x107   : > { %v1550_v28 = vsel %vm1547_vm9, %v1540_v21, %v1546_v23  ;;  %v1553_v29 = vsel %vm1547_vm9, %v1546_v23, %v1540_v21  ;;  %v4771_v1 = vrot.slane %v4223_v30, %v1705_v13  ;;  %v4774_v2 = vrot.slane %v4218_v27, %v1705_v13 }
 0x108   : > { %v1566_v31 = vmul.f32 %v4676_v63, %v1550_v28  ;;  %v1567_v33 = vmul.f32 %v4679_v0, %v1553_v29  ;;  %1609 = vmatprep.subr.bf16.mxu0 %v1576_v24  ;;  %v3871_v29 = vld [vmem:[%s5009_s7 + $0x98] sm:$0xff]  }
 0x109   : > { %2628 = vmatpush1.bf16.msra.mxu1 %v2620_v35  ;;  %1610 = vmatpush1.bf16.msra.mxu0 %v1575_v9  ;;  %v1987_v35 = vld [vmem:[%s5010_s8 + $0x28] sm:$0xff] }
 0x10a   : > { %v1577_v39 = vpack.c.bf16 %v1566_v31, %v1566_v31  ;;  %v1578_v40 = vpack.c.bf16 %v1567_v33, %v1567_v33  ;;  %v2687_v41 = vpop.permute.xlu0 %2686  ;;  %v2689_v37 = vpop.permute.xlu1 %2688  ;;  %3523 = vmatmul.mubr.msk.bf16.gmra.mrb[4].mxu0 %vm799_vm4, %v3865_v26  ;;  %2000 = vperm.xlu0 %3837, %v1984_v8   ;;  %v1985_v31 = vld [vmem:[%s5010_s8 + $0x18] sm:$0xff]  ;;  %v3872_v33 = vld [vmem:[%s5011_s9 + $0x60] sm:$0xff]  }
 0x10b   : > { %1512 = vmatprep.mubr.bf16.mxu0 %v3946_v14 }
 0x10c   : > { %3534 = vmatprep.subr.msk.bf16.mxu0 %vm809_vm3, %v1578_v40  ;;  %3606 = vmatmul.mubr.msk.bf16.gmra.mrb[16].mxu1 %vm2105_vm7, %v3866_v36  ;;  %v1604_v38 = vsel %vm809_vm3, %v1577_v39, 0 }
 0x10d   : > { %1612 = vmatpush1.bf16.msra.mxu0 %v1604_v38  ;;  %2657 = vmatprep.mubr.bf16.mxu1 %v3946_v14 }
 0x10e   : > { %v2693_v42 = vpop.permute.xlu0 %2692  ;;  %v2695_v43 = vpop.permute.xlu1 %2694  ;;  %2015 = vperm.xlu0 %3837, %v1987_v35  }
 0x10f   : > { %v2698_v16 = vsel %vm1547_vm9, %v2687_v41, %v2693_v42  ;;  %v2701_v44 = vsel %vm1547_vm9, %v2693_v42, %v2687_v41  ;;  %v2699_v20 = vsel %vm1547_vm9, %v2689_v37, %v2695_v43  ;;  %v2702_v19 = vsel %vm1547_vm9, %v2695_v43, %v2689_v37  ;;  %v3151_v37 = vld [vmem:[%s5014_s12] sm:$0xff] }
 0x110   : > { %v2704_v47 = vmul.f32 %v2698_v16, %v4676_v63  ;;  %v2705_v32 = vmul.f32 %v2701_v44, %v4679_v0  ;;  %v2706_v49 = vmul.f32 %v2699_v20, %v4676_v63  ;;  %v2707_v50 = vmul.f32 %v2702_v19, %v4679_v0 }
 0x112   : > { %v2715_v54 = vpack.c.bf16 %v2706_v49, %v2704_v47  ;;  %v2691_v55 = vpop.permute.xlu0 %2690  ;;  %v2697_v56 = vpop.permute.xlu1 %2696  ;;  %3524 = vmatmul.mubr.msk.bf16.gmra.mrb[8].mxu0 %vm799_vm4, %v3867_v15  ;;  %v2716_v57 = vpack.c.bf16 %v2707_v50, %v2705_v32  ;;  %v3873_v47 = vld [vmem:[%s5009_s7 + $0xa0] sm:$0xff]   ;;  %v3874_v50 = vld [vmem:[%s5011_s9 + $0x68] sm:$0xff]  }
 0x113   : > { %v2700_v58 = vsel %vm1547_vm9, %v2691_v55, %v2697_v56  ;;  %v2703_v59 = vsel %vm1547_vm9, %v2697_v56, %v2691_v55  ;;  %1641 = vmatprep.mubr.bf16.mxu0 %v3946_v14 }
 0x114   : > { %v2708_v52 = vmul.f32 %v2700_v58, %v4676_v63  ;;  %v2709_v11 = vmul.f32 %v2703_v59, %v4679_v0  ;;  %3614 = vmatmul.mubr.msk.bf16.vlgmr.msra.gmra.mrb[12].mxu1 %vm2105_vm7, %v3868_v51  ;;  %2741 = vmatprep.subr.bf16.mxu1 %v2716_v57  ;;  %v1983_v0 = vld [vmem:[%s5010_s8 + $0x8] sm:$0xff] }
 0x115   : > { %2742 = vmatpush1.bf16.msra.mxu1 %v2715_v54  ;;  %2667 = vmatprep.mubr.bf16.mxu1 %v3946_v14 }
 0x116   : > { %v2717_v53 = vpack.c.bf16 %v2708_v52, %v2708_v52  ;;  %v2718_v62 = vpack.c.bf16 %v2709_v11, %v2709_v11  ;;  %v1685_v34 = vpop.permute.xlu0 %1684  ;;  %1995 = vperm.xlu1 %3838, %v1983_v0   ;;  %v3551_v0 = vld [vmem:[%s5008_s6 + $0x10] ss:$0 sm:$0xff] }
 0x117   : > { %v1687_v63 = vpop.permute.xlu1 %1686 }
 0x118   : > { %3622 = vmatprep.subr.msk.bf16.mxu1 %vm682_vm0, %v2718_v62  ;;  %v2736_v22 = vsel %vm682_vm0, %v2717_v53, 0 }
 0x119   : > { %2744 = vmatpush1.bf16.msra.mxu1 %v2736_v22  ;;  %v3552_v22 = vld [vmem:[%s5008_s6 + $0x18] ss:$0 sm:$0xff] }
 0x11a   : > { %v1691_v10 = vpop.permute.xlu0 %1690  ;;  %3535 = vmatmul.mubr.msk.bf16.vlgmr.msra.gmra.mrb[0].mxu0 %vm799_vm4, %v3869_v48  ;;  %3055 = vperm.xlu1 %3838, %v3037_v18   ;;  %v3875_v48 = vld [vmem:[%s5009_s7 + $0xa8] sm:$0xff]  }
 0x11b   : > { %v1697_v30 = vsel %vm1696_vm10, %v1685_v34, %v1691_v10  ;;  %v1700_v27 = vsel %vm1696_vm10, %v1691_v10, %v1685_v34  ;;  %v1693_v17 = vpop.permute.xlu1 %1692  ;;  %1651 = vmatprep.mubr.bf16.mxu0 %v3946_v14 }
 0x11c   : > { %v1711_v12 = vmul.f32 %v4771_v1, %v1697_v30  ;;  %v1712_v3 = vmul.f32 %v4774_v2, %v1700_v27  ;;  %v1698_v4 = vsel %vm1696_vm10, %v1687_v63, %v1693_v17  ;;  %v1701_v7 = vsel %vm1696_vm10, %v1693_v17, %v1687_v63  ;;  %3615 = vmatmul.mubr.msk.bf16.gmra.mrb[16].mxu1 %vm2105_vm7, %v3870_v5 }
 0x11d   : > { %v1713_v9 = vmul.f32 %v4771_v1, %v1698_v4  ;;  %v1714_v21 = vmul.f32 %v4774_v2, %v1701_v7  ;;  %2773 = vmatprep.mubr.bf16.mxu1 %v3946_v14 }
 0x11e   : > { %v2803_v23 = vpop.permute.xlu0 %2802  ;;  %2005 = vperm.xlu1 %3838, %v1985_v31  }
 0x11f   : > { %v1724_v24 = vpack.c.bf16 %v1713_v9, %v1711_v12  ;;  %v2805_v26 = vpop.permute.xlu1 %2804  ;;  %v1725_v28 = vpack.c.bf16 %v1714_v21, %v1712_v3  ;;  %v3877_v21 = vld [vmem:[%s5009_s7 + $0xb0] sm:$0xff]  }
 0x121   : > { %1758 = vmatprep.subr.bf16.mxu0 %v1725_v28 }
 0x122   : > { %1759 = vmatpush1.bf16.msra.mxu0 %v1724_v24  ;;  %v2809_v36 = vpop.permute.xlu0 %2808  ;;  %3154 = vperm.xlu1 %3838, %v3151_v37  }
 0x123   : > { %v2814_v39 = vsel %vm1696_vm10, %v2803_v23, %v2809_v36  ;;  %v2817_v40 = vsel %vm1696_vm10, %v2809_v36, %v2803_v23  ;;  %v2811_v41 = vpop.permute.xlu1 %2810  ;;  %3536 = vmatmul.mubr.msk.bf16.gmra.mrb[4].mxu0 %vm799_vm4, %v3871_v29  ;;  %v3878_v29 = vld [vmem:[%s5011_s9 + $0x78] sm:$0xff]  }
 0x124   : > { %v2820_v38 = vmul.f32 %v2814_v39, %v4771_v1  ;;  %v2821_v42 = vmul.f32 %v2817_v40, %v4774_v2  ;;  %v2815_v43 = vsel %vm1696_vm10, %v2805_v26, %v2811_v41  ;;  %v2818_v15 = vsel %vm1696_vm10, %v2811_v41, %v2805_v26  ;;  %3623 = vmatmul.mubr.msk.bf16.vlgmr.msra.gmra.mrb[12].mxu1 %vm2105_vm7, %v3872_v33 }
 0x125   : > { %v2822_v16 = vmul.f32 %v2815_v43, %v4771_v1  ;;  %v2823_v44 = vmul.f32 %v2818_v15, %v4774_v2  ;;  %1661 = vmatprep.mubr.bf16.mxu0 %v3946_v14  ;;  %2783 = vmatprep.mubr.bf16.mxu1 %v3946_v14 }
 0x126   : > { %v1689_v20 = vpop.permute.xlu0 %1688 }
 0x127   : > { %v2831_v19 = vpack.c.bf16 %v2822_v16, %v2820_v38  ;;  %v1695_v45 = vpop.permute.xlu1 %1694  ;;  %v2832_v46 = vpack.c.bf16 %v2823_v44, %v2821_v42  ;;  %v3879_v42 = vld [vmem:[%s5009_s7 + $0xb8] sm:$0xff]  }
 0x128   : > { %v1699_v32 = vsel %vm1696_vm10, %v1689_v20, %v1695_v45  ;;  %v1702_v49 = vsel %vm1696_vm10, %v1695_v45, %v1689_v20  ;;  %v3880_v45 = vld [vmem:[%s5011_s9 + $0x80] sm:$0xff]  }
 0x129   : > { %v1715_v51 = vmul.f32 %v4771_v1, %v1699_v32  ;;  %v1716_v54 = vmul.f32 %v4774_v2, %v1702_v49  ;;  %2857 = vmatprep.subr.bf16.mxu1 %v2832_v46 }
 0x12a   : > { %2858 = vmatpush1.bf16.msra.mxu1 %v2831_v19  ;;  %v2807_v55 = vpop.permute.xlu0 %2806 }
 0x12b   : > { %v1726_v56 = vpack.c.bf16 %v1715_v51, %v1715_v51  ;;  %v1727_v57 = vpack.c.bf16 %v1716_v54, %v1716_v54  ;;  %v2813_v58 = vpop.permute.xlu1 %2812  ;;  %3537 = vmatmul.mubr.msk.bf16.gmra.mrb[8].mxu0 %vm799_vm4, %v3873_v47 }
 0x12c   : > { %v2816_v59 = vsel %vm1696_vm10, %v2807_v55, %v2813_v58  ;;  %v2819_v60 = vsel %vm1696_vm10, %v2813_v58, %v2807_v55  ;;  %3624 = vmatmul.mubr.msk.bf16.gmra.mrb[16].mxu1 %vm2105_vm7, %v3874_v50  ;;  %1790 = vmatprep.mubr.bf16.mxu0 %v3946_v14 }
 0x12d   : > { %v2824_v61 = vmul.f32 %v2816_v59, %v4771_v1  ;;  %v2825_v52 = vmul.f32 %v2819_v60, %v4774_v2  ;;  %3547 = vmatprep.subr.msk.bf16.mxu0 %vm809_vm3, %v1727_v57  ;;  %v1753_v11 = vsel %vm809_vm3, %v1726_v56, 0  ;;  %2889 = vmatprep.mubr.bf16.mxu1 %v3946_v14  ;;  %v3876_v1 = vld [vmem:[%s5011_s9 + $0x70] sm:$0xff]   ;;  %v3882_v59 = vld [vmem:[%s5011_s9 + $0x88] sm:$0xff]  }
 0x12e   : > { %1761 = vmatpush1.bf16.msra.mxu0 %v1753_v11  ;;  %v2919_v13 = vpop.permute.xlu0 %2918  ;;  %v3883_v60 = vld [vmem:[%s5009_s7 + $0xc8] sm:$0xff]  }
 0x12f   : > { %v2833_v53 = vpack.c.bf16 %v2824_v61, %v2824_v61  ;;  %v2834_v62 = vpack.c.bf16 %v2825_v52, %v2825_v52  ;;  %v2921_v34 = vpop.permute.xlu1 %2920  ;;  %v3884_v61 = vld [vmem:[%s5009_s7 + $0xd0] sm:$0xff]  }
 0x131   : > { %3631 = vmatprep.subr.msk.bf16.mxu1 %vm682_vm0, %v2834_v62  ;;  %v2852_v63 = vsel %vm682_vm0, %v2833_v53, 0 }
 0x132   : > { %2860 = vmatpush1.bf16.msra.mxu1 %v2852_v63  ;;  %v2925_v2 = vpop.permute.xlu0 %2924 }
 0x133   : > { %v2930_v5 = vsel %vm1845_vm11, %v2919_v13, %v2925_v2  ;;  %v2933_v6 = vsel %vm1845_vm11, %v2925_v2, %v2919_v13  ;;  %v2927_v10 = vpop.permute.xlu1 %2926  ;;  %3548 = vmatmul.mubr.msk.bf16.vlgmr.msra.gmra.mrb[0].mxu0 %vm799_vm4, %v3875_v48 }
 0x134   : > { %v2936_v30 = vmul.f32 %v3551_v0, %v2930_v5  ;;  %v2937_v27 = vmul.f32 %v3552_v22, %v2933_v6  ;;  %v2931_v17 = vsel %vm1845_vm11, %v2921_v34, %v2927_v10  ;;  %v2934_v18 = vsel %vm1845_vm11, %v2927_v10, %v2921_v34  ;;  %1800 = vmatprep.mubr.bf16.mxu0 %v3946_v14 }
 0x135   : > { %v2938_v12 = vmul.f32 %v3551_v0, %v2931_v17  ;;  %v2939_v3 = vmul.f32 %v3552_v22, %v2934_v18  ;;  %3632 = vmatmul.mubr.msk.bf16.vlgmr.msra.gmra.mrb[12].mxu1 %vm2105_vm7, %v3876_v1 }
 0x136   : > { %v2923_v4 = vpop.permute.xlu0 %2922  ;;  %2899 = vmatprep.mubr.bf16.mxu1 %v3946_v14 }
 0x137   : > { %v2947_v7 = vpack.c.bf16 %v2938_v12, %v2936_v30  ;;  %v2929_v8 = vpop.permute.xlu1 %2928  ;;  %v2948_v9 = vpack.c.bf16 %v2939_v3, %v2937_v27 }
 0x138   : > { %v2932_v23 = vsel %vm1845_vm11, %v2923_v4, %v2929_v8  ;;  %v2935_v24 = vsel %vm1845_vm11, %v2929_v8, %v2923_v4 }
 0x139   : > { %v2940_v26 = vmul.f32 %v3551_v0, %v2932_v23  ;;  %v2941_v28 = vmul.f32 %v3552_v22, %v2935_v24  ;;  %2973 = vmatprep.subr.bf16.mxu1 %v2948_v9 }
 0x13a   : > { %2974 = vmatpush1.bf16.msra.mxu1 %v2947_v7  ;;  %v1834_v31 = vpop.permute.xlu0 %1833 }
 0x13b   : > { %v2949_v33 = vpack.c.bf16 %v2940_v26, %v2940_v26  ;;  %v2950_v35 = vpack.c.bf16 %v2941_v28, %v2941_v28  ;;  %v1836_v36 = vpop.permute.xlu1 %1835  ;;  %3549 = vmatmul.mubr.msk.bf16.gmra.mrb[4].mxu0 %vm799_vm4, %v3877_v21 }
 0x13c   : > { %1810 = vmatprep.mubr.bf16.mxu0 %v3946_v14 }
 0x13d   : > { %3633 = vmatmul.mubr.msk.bf16.gmra.mrb[16].mxu1 %vm2105_vm7, %v3878_v29  ;;  %3640 = vmatprep.subr.msk.bf16.mxu1 %vm682_vm0, %v2950_v35  ;;  %v2968_v39 = vsel %vm682_vm0, %v2949_v33, 0 }
 0x13e   : > { %2976 = vmatpush1.bf16.msra.mxu1 %v2968_v39  ;;  %v1840_v40 = vpop.permute.xlu0 %1839  ;;  %3005 = vmatprep.mubr.bf16.mxu1 %v3946_v14 }
 0x13f   : > { %v1846_v41 = vsel %vm1845_vm11, %v1834_v31, %v1840_v40  ;;  %v1849_v37 = vsel %vm1845_vm11, %v1840_v40, %v1834_v31  ;;  %v1842_v38 = vpop.permute.xlu1 %1841 }
 0x140   : > { %v1860_v43 = vmul.f32 %v3551_v0, %v1846_v41  ;;  %v1861_v15 = vmul.f32 %v3552_v22, %v1849_v37  ;;  %v1847_v16 = vsel %vm1845_vm11, %v1836_v36, %v1842_v38  ;;  %v1850_v44 = vsel %vm1845_vm11, %v1842_v38, %v1836_v36 }
 0x141   : > { %v1862_v20 = vmul.f32 %v3551_v0, %v1847_v16  ;;  %v1863_v19 = vmul.f32 %v3552_v22, %v1850_v44 }
 0x142   : > { %v1838_v46 = vpop.permute.xlu0 %1837 }
 0x143   : > { %v1873_v47 = vpack.c.bf16 %v1862_v20, %v1860_v43  ;;  %v1844_v32 = vpop.permute.xlu1 %1843  ;;  %3550 = vmatmul.mubr.msk.bf16.gmra.mrb[8].mxu0 %vm799_vm4, %v3879_v42  ;;  %v1874_v49 = vpack.c.bf16 %v1863_v19, %v1861_v15 }
 0x144   : > { %v1848_v50 = vsel %vm1845_vm11, %v1838_v46, %v1844_v32  ;;  %v1851_v51 = vsel %vm1845_vm11, %v1844_v32, %v1838_v46  ;;  %1939 = vmatprep.mubr.bf16.mxu0 %v3946_v14 }
 0x145   : > { %v1864_v54 = vmul.f32 %v3551_v0, %v1848_v50  ;;  %v1865_v55 = vmul.f32 %v3552_v22, %v1851_v51  ;;  %1907 = vmatprep.subr.bf16.mxu0 %v1874_v49  ;;  %3641 = vmatmul.mubr.msk.bf16.vlgmr.msra.gmra.mrb[12].mxu1 %vm2105_vm7, %v3880_v45 }
 0x146   : > { %1908 = vmatpush1.bf16.msra.mxu0 %v1873_v47  ;;  %3015 = vmatprep.mubr.bf16.mxu1 %v3946_v14 }
 0x147   : > { %v1875_v56 = vpack.c.bf16 %v1864_v54, %v1864_v54  ;;  %v1876_v57 = vpack.c.bf16 %v1865_v55, %v1865_v55 }
 0x149   : > { %3562 = vmatprep.subr.msk.bf16.mxu0 %vm809_vm3, %v1876_v57  ;;  %v1902_v58 = vsel %vm809_vm3, %v1875_v56, 0 }
 0x14a   : > { %1910 = vmatpush1.bf16.msra.mxu0 %v1902_v58 }
 0x14d   : > { %3563 = vmatmul.mubr.msk.bf16.vlgmr.msra.gmra.mrb[0].mxu0 %vm799_vm4, %v3881_v25  ;;  %3642 = vmatmul.mubr.msk.bf16.gmra.mrb[16].mxu1 %vm2105_vm7, %v3882_v59 }
 0x14e   : > { %1949 = vmatprep.mubr.bf16.mxu0 %v3946_v14  ;;  %3193 = vmatprep.mubr.bf16.mxu1 %v3946_v14 }
 0x155   : > { %3564 = vmatmul.mubr.msk.bf16.gmra.mrb[4].mxu0 %vm799_vm4, %v3883_v60 }
 0x156   : > { %1959 = vmatprep.mubr.bf16.mxu0 %v3946_v14 }
 0x15d   : > { %3565 = vmatmul.mubr.msk.bf16.gmra.mrb[8].mxu0 %vm799_vm4, %v3884_v61 }
 0x170   : > { %v850_v52 = vpop.f32.mrb[0].mxu1 }
 0x171   : > { %v852_v11 = vpop.f32.mrb[1].mxu1 }
 0x172   : > { %v854_v13 = vpop.f32.mrb[2].mxu1 }
 0x173   : > { %v856_v53 = vpop.f32.mrb[3].mxu1 }
 0x178   : > { %v4945_v62 = vpop.f32.mrb[4].mxu1  ;;  %v3051_v2 = vpop.permute.xlu1 %3050 }
 0x179   : > { %v4947_v34 = vpop.f32.mrb[5].mxu1  ;;  %v3041_v6 = vpop.permute.xlu0 %3040 }
 0x17a   : > { %v4949_v48 = vpop.f32.mrb[6].mxu1 }
 0x17b   : > { %v4951_v63 = vpop.f32.mrb[7].mxu1 }
 0x17c   : > { %v3046_v5 = vpop.permute.xlu1 %3045 }
 0x17d   : > { %v1991_v21 = vpop.permute.xlu0 %1990 }
 0x185   : > { %v4961_v15 = vpop.permute.xlu0 %2010 }
 0x18c   : > { %v4953_v0 = vpop.f32.mrb[8].mxu1 }
 0x18d   : > { %v4955_v14 = vpop.f32.mrb[9].mxu1 }
 0x18e   : > { %v4957_v22 = vpop.f32.mrb[10].mxu1 }
 0x18f   : > { %v4959_v1 = vpop.f32.mrb[11].mxu1 }
 0x195   : > { %v1996_v17 = vpop.permute.xlu1 %1995 }
 0x199   : > { %v3056_v23 = vpop.permute.xlu1 %3055 }
 0x218   : > { %v3007_v10 = vpop.f32.mrb[12].mxu1 }
 0x219   : > { %v3058_v30 = vadd.f32 %v3041_v6, %v3007_v10  ;;  %v3009_v27 = vpop.f32.mrb[13].mxu1 }
 0x21a   : > { %v3059_v18 = vadd.f32 %v3041_v6, %v3009_v27  ;;  %v3011_v12 = vpop.f32.mrb[14].mxu1 }
 0x21b   : > { %v3108_v3 = vmul.f32 0.5, %v3058_v30  ;;  %v3013_v4 = vpop.f32.mrb[15].mxu1  ;;  %v3060_v8 = vadd.f32 %v3046_v5, %v3011_v12 }
 0x21c   : > { %v3109_v7 = vmul.f32 0.5, %v3059_v18  ;;  %v3061_v9 = vadd.f32 %v3046_v5, %v3013_v4 }
 0x21d   : > { %3885 = vtanh.f32 %v3108_v3 }
 0x21e   : > { %3887 = vtanh.f32 %v3109_v7 }
 0x21f   : > { %3889 = vtanh.f32 %v3060_v8 }
 0x220   : > { %v3017_v24 = vpop.f32.mrb[16].mxu1  ;;  %v1941_v26 = vpop.f32.mrb[0].mxu0  ;;  %3891 = vtanh.f32 %v3061_v9 }
 0x221   : > { %v3062_v28 = vadd.f32 %v3051_v2, %v3017_v24  ;;  %v3660_v29 = vadd.f32 %v1941_v26, %v850_v52  ;;  %v1943_v31 = vpop.f32.mrb[1].mxu0  ;;  %v3019_v33 = vpop.f32.mrb[17].mxu1 }
 0x222   : > { %v3661_v35 = vadd.f32 %v1943_v31, %v852_v11  ;;  %v3063_v36 = vadd.f32 %v3051_v2, %v3019_v33  ;;  %v1945_v39 = vpop.f32.mrb[2].mxu0  ;;  %v3021_v40 = vpop.f32.mrb[18].mxu1 }
 0x223   : > { %v3118_v41 = vmul.f32 0.5, %v3062_v28  ;;  %v2018_v37 = vadd.f32 %v3660_v29, %v1991_v21  ;;  %v3662_v38 = vadd.f32 %v1945_v39, %v854_v13  ;;  %v1947_v42 = vpop.f32.mrb[3].mxu0  ;;  %v3023_v43 = vpop.f32.mrb[19].mxu1  ;;  %v3064_v20 = vadd.f32 %v3056_v23, %v3021_v40 }
 0x224   : > { %v2019_v16 = vadd.f32 %v3661_v35, %v1991_v21  ;;  %v3119_v44 = vmul.f32 0.5, %v3063_v36  ;;  %v3663_v19 = vadd.f32 %v1947_v42, %v856_v53  ;;  %v3065_v25 = vadd.f32 %v3056_v23, %v3023_v43  ;;  %v2001_v52 = vpop.permute.xlu0 %2000 }
 0x225   : > { %3893 = vtanh.f32 %v3118_v41  ;;  %v3066_v45 = vmul.f32 0.5, %v2018_v37  ;;  %v2020_v46 = vadd.f32 %v3662_v38, %v1996_v17  ;;  %v3126_v55 = vmul.f32 0.5, %v3064_v20  ;;  %v3933_v38 = vld [vmem:[%s4146_s19] sm:$0xff] }
 0x226   : > { %v3067_v47 = vmul.f32 0.5, %v2019_v16  ;;  %3895 = vtanh.f32 %v3119_v44  ;;  %v2021_v32 = vadd.f32 %v3663_v19, %v1996_v17  ;;  %v2006_v17 = vpop.permute.xlu1 %2005  ;;  %v3127_v3 = vmul.f32 0.5, %v3065_v25 }
 0x227   : > { %v3886_v49 = vpop.eup %3885  ;;  %3897 = vtanh.f32 %v3066_v45  ;;  %v3074_v50 = vmul.f32 0.5, %v2020_v46 }
 0x228   : > { %v3888_v51 = vpop.eup %3887  ;;  %v3112_v54 = vmul.f32 0.5, %v3886_v49  ;;  %3899 = vtanh.f32 %v3067_v47  ;;  %v3075_v56 = vmul.f32 0.5, %v2021_v32  ;;  %v1951_v57 = vpop.f32.mrb[4].mxu0 }
 0x229   : > { %v3113_v58 = vmul.f32 0.5, %v3888_v51  ;;  %3901 = vtanh.f32 %v3074_v50  ;;  %v3664_v59 = vadd.f32 %v1951_v57, %v4945_v62  ;;  %v1953_v60 = vpop.f32.mrb[5].mxu0  ;;  %v3890_v53 = vpop.eup %3889 }
 0x22a   : > { %v3114_v61 = vadd.f32 0.5, %v3112_v54  ;;  %v3665_v11 = vadd.f32 %v1953_v60, %v4947_v34  ;;  %v1955_v13 = vpop.f32.mrb[6].mxu0  ;;  %3903 = vtanh.f32 %v3075_v56  ;;  %v3892_v30 = vpop.eup %3891 }
 0x22b   : > { %v3115_v2 = vadd.f32 0.5, %v3113_v58  ;;  %v2022_v5 = vadd.f32 %v3664_v59, %v2001_v52  ;;  %v3666_v6 = vadd.f32 %v1955_v13, %v4949_v48  ;;  %v1957_v10 = vpop.f32.mrb[7].mxu0  ;;  %3905 = vtanh.f32 %v3126_v55 }
 0x22c   : > { %v3136_v27 = vmul.f32 %v3890_v53, %v3114_v61  ;;  %v2023_v18 = vadd.f32 %v3665_v11, %v2001_v52  ;;  %v3667_v62 = vadd.f32 %v1957_v10, %v4951_v63 }
 0x22d   : > { %v3137_v12 = vmul.f32 %v3892_v30, %v3115_v2  ;;  %3907 = vtanh.f32 %v2022_v5  ;;  %v2024_v4 = vadd.f32 %v3666_v6, %v2006_v17 }
 0x22e   : > { %3909 = vtanh.f32 %v2023_v18  ;;  %v2025_v34 = vadd.f32 %v3667_v62, %v2006_v17 }
 0x22f   : > { %v3894_v7 = vpop.eup %3893  ;;  %3911 = vtanh.f32 %v2024_v4 }
 0x230   : > { %v3896_v8 = vpop.eup %3895  ;;  %v3122_v9 = vmul.f32 0.5, %v3894_v7  ;;  %3913 = vtanh.f32 %v2025_v34  ;;  %v1961_v48 = vpop.f32.mrb[8].mxu0 }
 0x231   : > { %v3898_v21 = vpop.eup %3897  ;;  %v3123_v23 = vmul.f32 0.5, %v3896_v8  ;;  %3915 = vtanh.f32 %v3127_v3  ;;  %v3668_v24 = vadd.f32 %v1961_v48, %v4953_v0  ;;  %v1963_v26 = vpop.f32.mrb[9].mxu0  ;;  %v3936_v8 = vld [vmem:[%s4053_s27 + $0x8] sm:$0xff] }
 0x232   : > { %v3900_v63 = vpop.eup %3899  ;;  %v3124_v28 = vadd.f32 0.5, %v3122_v9  ;;  %v3070_v29 = vmul.f32 0.5, %v3898_v21  ;;  %v3669_v31 = vadd.f32 %v1963_v26, %v4955_v14  ;;  %v1965_v33 = vpop.f32.mrb[10].mxu0  ;;  %v3934_v14 = vld [vmem:[%s4146_s19 + $0x8] sm:$0xff] }
 0x233   : > { %v3902_v35 = vpop.eup %3901  ;;  %v3071_v36 = vmul.f32 0.5, %v3900_v63  ;;  %v3125_v39 = vadd.f32 0.5, %v3123_v23  ;;  %v2026_v40 = vadd.f32 %v3668_v24, %v4961_v15  ;;  %v4971_v41 = vadd.f32 %v1965_v33, %v4957_v22  ;;  %v1967_v37 = vpop.f32.mrb[11].mxu0  ;;  %v3150_v24 = vld [vmem:[%s5013_s11] sm:$0xf] }
 0x234   : > { %v3134_v0 = vmul.f32 %v3933_v38, %v3124_v28  ;;  %v3078_v42 = vmul.f32 0.5, %v3902_v35  ;;  %v2027_v43 = vadd.f32 %v3669_v31, %v4961_v15  ;;  %v3904_v16 = vpop.eup %3903  ;;  %v3072_v32 = vadd.f32 0.5, %v3070_v29  ;;  %v2016_v26 = vpop.permute.xlu0 %2015 }
 0x235   : > { %v3135_v44 = vmul.f32 %v3934_v14, %v3125_v39  ;;  %v3086_v20 = vmul.f32 0.5, %v2026_v40  ;;  %v3906_v19 = vpop.eup %3905  ;;  %v3079_v46 = vmul.f32 0.5, %v3904_v16  ;;  %v3073_v49 = vadd.f32 0.5, %v3071_v36  ;;  %v3155_v33 = vpop.permute.xlu1 %3154 }
 0x236   : > { %v3138_v45 = vadd.f32 %v3136_v27, %v3134_v0  ;;  %v3087_v47 = vmul.f32 0.5, %v2027_v43  ;;  %v3080_v15 = vadd.f32 0.5, %v3078_v42  ;;  %v3671_v54 = vadd.f32 %v1967_v37, %v4959_v1 }
 0x237   : > { %v3908_v22 = vpop.eup %3907  ;;  %v3139_v50 = vadd.f32 %v3137_v12, %v3135_v44  ;;  %3917 = vtanh.f32 %v3086_v20  ;;  %v3081_v56 = vadd.f32 0.5, %v3079_v46  ;;  %v3130_v52 = vmul.f32 0.5, %v3906_v19  ;;  %v3935_v12 = vld [vmem:[%s4053_s27] sm:$0xff] }
 0x238   : > { %v3910_v51 = vpop.eup %3909  ;;  %3919 = vtanh.f32 %v3138_v45  ;;  %3212 = vst [vmem:[%s658_s29] sm:$0xff] %v3138_v45  ;;  %v3144_v58 = vmul.f32 %v3908_v22, %v3072_v32  ;;  %v2028_v63 = vadd.f32 %v4971_v41, %v2016_v26  ;;  %v2029_v28 = vadd.f32 %v3671_v54, %v2016_v26 }
 0x239   : > { %v3912_v55 = vpop.eup %3911  ;;  %3921 = vtanh.f32 %v3139_v50  ;;  %3213 = vst [vmem:[%s658_s29 + $0x8] sm:$0xff] %v3139_v50  ;;  %v3145_v57 = vmul.f32 %v3910_v51, %v3073_v49  ;;  %v3132_v53 = vadd.f32 0.5, %v3130_v52 }
 0x23a   : > { %v3914_v25 = vpop.eup %3913  ;;  %3923 = vtanh.f32 %v3087_v47  ;;  %v3104_v59 = vmul.f32 %v3912_v55, %v3080_v15  ;;  %v3094_v29 = vmul.f32 0.5, %v2028_v63  ;;  %v3095_v31 = vmul.f32 0.5, %v2029_v28 }
 0x23b   : > { %v3916_v60 = vpop.eup %3915  ;;  %v3105_v61 = vmul.f32 %v3914_v25, %v3081_v56 }
 0x23c   : > { %v3131_v11 = vmul.f32 0.5, %v3916_v60  ;;  %3925 = vtanh.f32 %v3094_v29 }
 0x23d   : > { %3927 = vtanh.f32 %v3095_v31 }
 0x23e   : > { %v3133_v1 = vadd.f32 0.5, %v3131_v11 }
 0x241   : > { %v3918_v13 = vpop.eup %3917 }
 0x242   : > { %v3920_v2 = vpop.eup %3919  ;;  %v3090_v5 = vmul.f32 0.5, %v3918_v13 }
 0x243   : > { %v3922_v6 = vpop.eup %3921  ;;  %v3142_v10 = vmul.f32 %v3920_v2, %v3132_v53 }
 0x244   : > { %v3924_v30 = vpop.eup %3923  ;;  %v3143_v27 = vmul.f32 %v3922_v6, %v3133_v1  ;;  %v3092_v17 = vadd.f32 0.5, %v3090_v5 }
 0x245   : > { %v3091_v18 = vmul.f32 0.5, %v3924_v30  ;;  %v3146_v62 = vadd.f32 %v3144_v58, %v3142_v10 }
 0x246   : > { %v3102_v3 = vmul.f32 %v3935_v12, %v3092_v17  ;;  %v3147_v4 = vadd.f32 %v3145_v57, %v3143_v27  ;;  %v3926_v0 = vpop.eup %3925 }
 0x247   : > { %v3093_v34 = vadd.f32 0.5, %v3091_v18  ;;  %3208 = vst [vmem:[%s648_s0] sm:$0xff] %v3146_v62  ;;  %v3928_v42 = vpop.eup %3927  ;;  %v3098_v43 = vmul.f32 0.5, %v3926_v0 }
 0x248   : > { %3209 = vst [vmem:[%s648_s0 + $0x8] sm:$0xff] %v3147_v4  ;;  %v3106_v7 = vadd.f32 %v3104_v59, %v3102_v3  ;;  %v3099_v16 = vmul.f32 0.5, %v3928_v42 }
 0x249   : > { %v3103_v9 = vmul.f32 %v3936_v8, %v3093_v34  ;;  %v3100_v41 = vadd.f32 0.5, %v3098_v43 }
 0x24a   : > { %v3148_v48 = vpack.c.bf16 %v3106_v7, %v3146_v62  ;;  %3210 = vst [vmem:[%s653_s25] sm:$0xff] %v3106_v7  ;;  %v3101_v44 = vadd.f32 0.5, %v3099_v16 }
 0x24b   : > { %v3107_v21 = vadd.f32 %v3105_v61, %v3103_v9 }
 0x24d   : > { %v3149_v23 = vpack.c.bf16 %v3107_v21, %v3147_v4  ;;  %3211 = vst [vmem:[%s653_s25 + $0x8] sm:$0xff] %v3107_v21 }
 0x24f   : > { %3161 = vmatprep.subr.bf16.mxu1 %v3149_v23 }
 0x250   : > { %3162 = vmatpush1.bf16.msra.mxu1 %v3148_v48 }
 0x253   : > { %3643 = vmatmul.mubr.msk.bf16.vlgmr.msra.gmra.mrb[20].mxu1 %vm3157_vm12, %v3150_v24 }
 0x326   : > { %v3195_v35 = vpop.f32.mrb[20].mxu1 }
 0x327   : > { %v3196_v36 = vadd.f32 %v3195_v35, %v3155_v33  ;;  %v3197_v39 = vpop.f32.mrb[21].mxu1 }
 0x328   : > { %v3198_v40 = vadd.f32 %v3197_v39, %v3155_v33  ;;  %v3199_v37 = vpop.f32.mrb[22].mxu1 }
 0x329   : > { %3929 = vtanh.f32 %v3196_v36  ;;  %v3200_v38 = vpop.f32.mrb[23].mxu1 }
 0x32a   : > { %3931 = vtanh.f32 %v3198_v40 }
 0x333   : > { %v3930_v14 = vpop.eup %3929 }
 0x334   : > { %v3932_v20 = vpop.eup %3931  ;;  %v3204_v19 = vmul.f32 %v3930_v14, %v3100_v41 }
 0x335   : > { %v3205_v45 = vmul.f32 %v3932_v20, %v3101_v44 }
 0x336   : > { %3206 = vst [vmem:[%s643_s26] sm:$0xff] %v3204_v19 }
 0x337   : > { %3207 = vst [vmem:[%s643_s26 + $0x8] sm:$0xff] %v3205_v45 }
 0x338 PF: > { %s27_s21 = sadd.s32 1, %s3943_s21  }
 0x339   : > { %p24_p4 = scmp.ge.s32.totalorder %s27_s21, 4  }
 0x33b   :  { %26 = sbr.rel (!%p24_p4) target bundleno = 2 (0x2), region = 169 }

</bundles_post_ra>
